<compile_context>
chip_gen: v7x
topology: tpu7x:2x2x1
jax: 0.10.0
libtpu: 0.0.40
codegen_flags: <defaults>
</compile_context>

<pallas_src>
import functools
import numpy as np
import jax
import jax.numpy as jnp
from jax.experimental import pallas as pl
from jax.experimental.pallas import tpu as pltpu

BN_EPS = 1e-5
BN_SCALE = 1.0 / (1.0 + BN_EPS) ** 0.5   # BatchNorm1d(eval) with default running stats


def autoint_kernel(embed_ref, fc_ref, bias_ref, attw_ref,
                   mlp_w0_ref, mlp_b0_ref, mlp_w1_ref, mlp_b1_ref,
                   dnn_w_att_ref, dnn_w_mlp_ref, out_ref,
                   *, num_heads, att_layer_num, att_res):
    x = embed_ref[...]                                    # (TB, F, E) f32
    TB, F, E = x.shape
    H = num_heads
    d = E // H

    # ---- FeaturesLinear: sum of per-field linear terms + scalar bias (SMEM) ----
    logit = jnp.sum(fc_ref[...], axis=1, keepdims=True) + bias_ref[0]     # (TB, 1)

    # ---- InteractingLayers ----
    att = x
    for l in range(att_layer_num):
        w = attw_ref[l]                                   # (E, 4E) = [Wq | Wk | Wv | Wres]
        att2d = att.reshape(TB * F, E)
        # One fused MXU matmul for Q, K, V and the residual projection.
        qkvr = jnp.dot(att2d, w, preferred_element_type=jnp.float32)      # (TB*F, 4E)

        def split_heads(base):
            # Stack heads on a leading (major) axis: rows [h*TB:(h+1)*TB] = head h.
            return jnp.concatenate(
                [qkvr[:, base + h * d: base + (h + 1) * d].reshape(TB, F, d)
                 for h in range(H)], axis=0)              # (H*TB, F, d)

        qs = split_heads(0)
        ks = split_heads(E)
        vs = split_heads(2 * E)

        # Batched attention over all (batch, head) pairs in one dot each.
        s = jnp.einsum('zik,zjk->zij', qs, ks,
                       preferred_element_type=jnp.float32)                # (H*TB, F, F)
        m = jnp.max(s, axis=-1, keepdims=True)
        p = jnp.exp(s - m)
        p = p * pl.reciprocal(jnp.sum(p, axis=-1, keepdims=True), approx=True)
        o = jnp.einsum('zij,zjd->zid', p, vs,
                       preferred_element_type=jnp.float32)                # (H*TB, F, d)

        # Re-interleave heads onto the embedding (lane) axis.
        res = jnp.concatenate([o[h * TB:(h + 1) * TB] for h in range(H)],
                              axis=-1)                                    # (TB, F, E)
        if att_res:
            res = res + qkvr[:, 3 * E:4 * E].reshape(TB, F, E)
        att = jnp.maximum(res, 0.0)                       # ReLU

    att_out = att.reshape(TB, F * E)                      # (TB, F*E)

    # ---- MLP on flattened raw embeddings (BN scale pre-folded into weights) ----
    h0 = x.reshape(TB, F * E)
    h1 = jnp.maximum(jnp.dot(h0, mlp_w0_ref[...],
                             preferred_element_type=jnp.float32) + mlp_b0_ref[...], 0.0)
    h2 = jnp.maximum(jnp.dot(h1, mlp_w1_ref[...],
                             preferred_element_type=jnp.float32) + mlp_b1_ref[...], 0.0)

    # ---- final linear, split to avoid the lane-crossing concat ----
    logit = logit + jnp.sum(att_out * dnn_w_att_ref[...], axis=-1, keepdims=True)
    logit = logit + jnp.sum(h2 * dnn_w_mlp_ref[...], axis=-1, keepdims=True)
    out_ref[...] = jax.nn.sigmoid(logit)                  # (TB, 1)


def _pick_batch_tile(B):
    # Largest divisor tile <= 512: amortizes per-grid-step overhead (~0.35 us)
    # and lengthens the MXU M dimension, while a double-buffered embedding tile
    # plus live activations stays < ~3 MiB of VMEM on every generation
    # (v5e/v6e scoped 16/32 MiB, v7x 32 MiB).
    for tb in (512, 256, 128, 64, 32, 16, 8):
        if B % tb == 0:
            return tb
    return B


def prepare_kernel_params(params):
    """One-time, offline packing/folding of model parameters for the kernel."""
    att_w = params['att_w']                                             # (L, 4, E, E)
    attw_packed = jnp.concatenate([att_w[:, i] for i in range(4)], axis=-1)   # (L, E, 4E)
    f_e = params['mlp_w0'].shape[0]                                     # F*E
    return {
        'attw_packed': attw_packed,
        'mlp_w0': params['mlp_w0'] * BN_SCALE,                          # BN scale folded
        'mlp_b0': params['mlp_b0'].reshape(1, -1) * BN_SCALE,
        'mlp_w1': params['mlp_w1'] * BN_SCALE,
        'mlp_b1': params['mlp_b1'].reshape(1, -1) * BN_SCALE,
        'dnn_w_att': params['dnn_w'][:f_e, 0].reshape(1, f_e),
        'dnn_w_mlp': params['dnn_w'][f_e:, 0].reshape(1, -1),
        'lin_bias': params['lin_bias'].reshape(1).astype(jnp.float32),  # SMEM scalar
    }


def autoint_forward(x_idx, params, kparams, *, num_heads, att_layer_num, att_res):
    """x_idx: (B, F) int32 per-field category ids."""
    offsets = params['offsets']
    idx = x_idx + offsets[None, :]
    # TODO(synk): fuse these embedding-row gathers into the kernel via
    # PrefetchScalarGridSpec + per-row DMA for large-vocab / large-batch serving
    # (avoids one full HBM round trip of the gathered activations).
    embed_x = params['embed_table'][idx].astype(jnp.float32)            # (B, F, E)
    fc_x = params['fc_table'][idx, 0].astype(jnp.float32)               # (B, F)

    B, F, E = embed_x.shape
    TB = _pick_batch_tile(B)
    nb = B // TB

    kernel = functools.partial(autoint_kernel, num_heads=num_heads,
                               att_layer_num=att_layer_num, att_res=att_res)

    def full(shape):
        return pl.BlockSpec(shape, lambda i: (0,) * len(shape))

    grid_spec = pltpu.PrefetchScalarGridSpec(
        num_scalar_prefetch=0,
        grid=(nb,),
        in_specs=[
            pl.BlockSpec((TB, F, E), lambda i: (i, 0, 0)),              # embed tile
            pl.BlockSpec((TB, F), lambda i: (i, 0)),                    # fc tile
            pl.BlockSpec(memory_space=pltpu.MemorySpace.SMEM),          # linear bias
            full(kparams['attw_packed'].shape),
            full(kparams['mlp_w0'].shape),
            full(kparams['mlp_b0'].shape),
            full(kparams['mlp_w1'].shape),
            full(kparams['mlp_b1'].shape),
            full(kparams['dnn_w_att'].shape),
            full(kparams['dnn_w_mlp'].shape),
        ],
        out_specs=pl.BlockSpec((TB, 1), lambda i: (i, 0)),
    )

    out = pl.pallas_call(
        kernel,
        out_shape=jax.ShapeDtypeStruct((B, 1), jnp.float32),
        grid_spec=grid_spec,
        compiler_params=pltpu.CompilerParams(
            dimension_semantics=("parallel",)),
    )(embed_x, fc_x, kparams['lin_bias'], kparams['attw_packed'],
      kparams['mlp_w0'], kparams['mlp_b0'], kparams['mlp_w1'], kparams['mlp_b1'],
      kparams['dnn_w_att'], kparams['dnn_w_mlp'])
    return out[:, 0]                                                    # (B,) like .squeeze(1)


def autoint_reference(x_idx, params, *, num_heads, att_layer_num, att_res):
    """Pure-JAX reference (unpacked weights, exact softmax, explicit BN scale)."""
    offsets = params['offsets']
    idx = x_idx + offsets[None, :]
    embed_x = params['embed_table'][idx].astype(jnp.float32)
    fc_x = params['fc_table'][idx, 0].astype(jnp.float32)
    B, F, E = embed_x.shape
    d = E // num_heads

    logit = jnp.sum(fc_x, axis=1, keepdims=True) + params['lin_bias'][None, :]
    att = embed_x
    for l in range(att_layer_num):
        w_q, w_k, w_v, w_r = (params['att_w'][l, i] for i in range(4))
        q = jnp.einsum('bfe,ed->bfd', att, w_q)
        k = jnp.einsum('bfe,ed->bfd', att, w_k)
        v = jnp.einsum('bfe,ed->bfd', att, w_v)
        heads = []
        for h in range(num_heads):
            qh = q[:, :, h * d:(h + 1) * d]
            kh = k[:, :, h * d:(h + 1) * d]
            vh = v[:, :, h * d:(h + 1) * d]
            s = jnp.einsum('bik,bjk->bij', qh, kh)
            p = jax.nn.softmax(s, axis=-1)
            heads.append(jnp.einsum('bij,bjd->bid', p, vh))
        res = jnp.concatenate(heads, axis=-1)
        if att_res:
            res = res + jnp.einsum('bfe,ed->bfd', att, w_r)
        att = jnp.maximum(res, 0.0)
    att_out = att.reshape(B, F * E)

    h0 = embed_x.reshape(B, F * E)
    h1 = jnp.maximum((h0 @ params['mlp_w0'] + params['mlp_b0']) * BN_SCALE, 0.0)
    h2 = jnp.maximum((h1 @ params['mlp_w1'] + params['mlp_b1']) * BN_SCALE, 0.0)

    stack = jnp.concatenate([att_out, h2], axis=-1)
    logit = logit + stack @ params['dnn_w']
    return jax.nn.sigmoid(logit)[:, 0]


if __name__ == "__main__":
    # Model config (small, consistent with the module's __init__).
    field_dims = [10, 20, 30, 15, 25, 12, 18, 22]        # F = 8 fields
    embed_dim = 16
    att_layer_num = 2
    att_head_num = 2
    att_res = True
    mlp_dims = (32, 16)
    B = 8
    F = len(field_dims)
    total = sum(field_dims)
    embed_out = F * embed_dim
    dnn_in = embed_out + mlp_dims[-1]

    key = jax.random.PRNGKey(0)
    ks = jax.random.split(key, 12)

    params = {
        'offsets': jnp.array(np.concatenate([[0], np.cumsum(field_dims)[:-1]]),
                             dtype=jnp.int32),
        'embed_table': 0.05 * jax.random.normal(ks[0], (total, embed_dim), jnp.float32),
        'fc_table':    0.05 * jax.random.normal(ks[1], (total, 1), jnp.float32),
        'lin_bias':    0.01 * jax.random.normal(ks[9], (1,), jnp.float32),
        'att_w':       0.05 * jax.random.normal(ks[2], (att_layer_num, 4,
                                                        embed_dim, embed_dim), jnp.float32),
        'mlp_w0': 0.05 * jax.random.normal(ks[3], (embed_out, mlp_dims[0]), jnp.float32),
        'mlp_b0': 0.01 * jax.random.normal(ks[4], (mlp_dims[0],), jnp.float32),
        'mlp_w1': 0.05 * jax.random.normal(ks[5], (mlp_dims[0], mlp_dims[1]), jnp.float32),
        'mlp_b1': 0.01 * jax.random.normal(ks[6], (mlp_dims[1],), jnp.float32),
        'dnn_w':  0.05 * jax.random.normal(ks[7], (dnn_in, 1), jnp.float32),
    }

    # Integer categorical inputs, one id per field, in-range per field.
    x_cols = [jax.random.randint(jax.random.fold_in(ks[8], f), (B, 1), 0, field_dims[f])
              for f in range(F)]
    x_idx = jnp.concatenate(x_cols, axis=1).astype(jnp.int32)           # (B, F)

    kparams = prepare_kernel_params(params)                             # offline packing

    out = autoint_forward(x_idx, params, kparams, num_heads=att_head_num,
                          att_layer_num=att_layer_num, att_res=att_res)
    out = jax.block_until_ready(out)

    ref = autoint_reference(x_idx, params, num_heads=att_head_num,
                            att_layer_num=att_layer_num, att_res=att_res)
    # Tolerance loosened slightly for the approx-reciprocal softmax denominator.
    np.testing.assert_allclose(np.asarray(out), np.asarray(ref),
                               rtol=2e-3, atol=2e-4)
    assert out.shape == (B,) and np.all(np.isfinite(np.asarray(out)))
    print("KERNEL_OK")
</pallas_src>

<mosaic_0001>
module attributes {stable_mosaic.version = 11 : i64} {
  func.func @autoint_kernel(%arg0: i32, %arg1: memref<8x8x16xf32, #tpu.memory_space<vmem>>, %arg2: memref<8x8xf32, #tpu.memory_space<vmem>>, %arg3: memref<1xf32, #tpu.memory_space<smem>>, %arg4: memref<2x16x64xf32, #tpu.memory_space<vmem>>, %arg5: memref<128x32xf32, #tpu.memory_space<vmem>>, %arg6: memref<1x32xf32, #tpu.memory_space<vmem>>, %arg7: memref<32x16xf32, #tpu.memory_space<vmem>>, %arg8: memref<1x16xf32, #tpu.memory_space<vmem>>, %arg9: memref<1x128xf32, #tpu.memory_space<vmem>>, %arg10: memref<1x16xf32, #tpu.memory_space<vmem>>, %arg11: memref<8x1xf32, #tpu.memory_space<vmem>>) attributes {dimension_semantics = [#tpu.dimension_semantics<parallel>], iteration_bounds = array<i64: 1>, scalar_prefetch = 0 : i64, scratch_operands = 0 : i64, tpu.core_type = #tpu.core_type<tc>, window_params = [{transform_indices = @transform_0, window_bounds = array<i64: 8, 8, 16>}, {transform_indices = @transform_1, window_bounds = array<i64: 8, 8>}, {transform_indices = @transform_2, window_bounds = array<i64: 1>}, {pipeline_mode = #tpu.pipeline_mode<synchronous>, transform_indices = @transform_3, window_bounds = array<i64: 2, 16, 64>}, {pipeline_mode = #tpu.pipeline_mode<synchronous>, transform_indices = @transform_4, window_bounds = array<i64: 128, 32>}, {pipeline_mode = #tpu.pipeline_mode<synchronous>, transform_indices = @transform_5, window_bounds = array<i64: 1, 32>}, {pipeline_mode = #tpu.pipeline_mode<synchronous>, transform_indices = @transform_6, window_bounds = array<i64: 32, 16>}, {pipeline_mode = #tpu.pipeline_mode<synchronous>, transform_indices = @transform_7, window_bounds = array<i64: 1, 16>}, {pipeline_mode = #tpu.pipeline_mode<synchronous>, transform_indices = @transform_8, window_bounds = array<i64: 1, 128>}, {pipeline_mode = #tpu.pipeline_mode<synchronous>, transform_indices = @transform_9, window_bounds = array<i64: 1, 16>}, {transform_indices = @transform_10, window_bounds = array<i64: 8, 1>}]} {
    %c0 = arith.constant 0 : index
    %c0_0 = arith.constant 0 : index
    %c0_1 = arith.constant 0 : index
    %0 = vector.load %arg1[%c0, %c0_0, %c0_1] : memref<8x8x16xf32, #tpu.memory_space<vmem>>, vector<8x8x16xf32>
    %c0_2 = arith.constant 0 : index
    %c0_3 = arith.constant 0 : index
    %1 = vector.load %arg2[%c0_2, %c0_3] : memref<8x8xf32, #tpu.memory_space<vmem>>, vector<8x8xf32>
    %cst = arith.constant dense<0.000000e+00> : vector<8xf32>
    %2 = vector.multi_reduction <add>, %1, %cst [1] : vector<8x8xf32> to vector<8xf32>
    %3 = vector.shape_cast %2 : vector<8xf32> to vector<8x1xf32>
    %c0_4 = arith.constant 0 : index
    %4 = memref.load %arg3[%c0_4] : memref<1xf32, #tpu.memory_space<smem>>
    %5 = vector.broadcast %4 : f32 to vector<8x1xf32>
    %6 = arith.addf %3, %5 : vector<8x1xf32>
    %c0_5 = arith.constant 0 : index
    %c0_6 = arith.constant 0 : index
    %c0_7 = arith.constant 0 : index
    %7 = vector.load %arg4[%c0_5, %c0_6, %c0_7] : memref<2x16x64xf32, #tpu.memory_space<vmem>>, vector<1x16x64xf32>
    %8 = vector.shape_cast %7 : vector<1x16x64xf32> to vector<16x64xf32>
    %9 = vector.shape_cast %0 : vector<8x8x16xf32> to vector<64x16xf32>
    %cst_8 = arith.constant dense<0.000000e+00> : vector<64x64xf32>
    %10 = tpu.matmul %9, %8, %cst_8 {dimension_numbers = #tpu.dot_dimension_numbers<[1], [0], [0], [1], [0, 0, 1, 1], [], []>} : vector<64x16xf32>, vector<16x64xf32>, vector<64x64xf32> -> vector<64x64xf32>
    %11 = vector.extract_strided_slice %10 {offsets = [0, 0], sizes = [64, 8], strides = [1, 1]} : vector<64x64xf32> to vector<64x8xf32>
    %12 = vector.shape_cast %11 : vector<64x8xf32> to vector<8x8x8xf32>
    %13 = vector.extract_strided_slice %10 {offsets = [0, 8], sizes = [64, 8], strides = [1, 1]} : vector<64x64xf32> to vector<64x8xf32>
    %14 = vector.shape_cast %13 : vector<64x8xf32> to vector<8x8x8xf32>
    %15 = tpu.concatenate %12, %14 in 0 : vector<8x8x8xf32>, vector<8x8x8xf32> -> vector<16x8x8xf32>
    %16 = vector.extract_strided_slice %10 {offsets = [0, 16], sizes = [64, 8], strides = [1, 1]} : vector<64x64xf32> to vector<64x8xf32>
    %17 = vector.shape_cast %16 : vector<64x8xf32> to vector<8x8x8xf32>
    %18 = vector.extract_strided_slice %10 {offsets = [0, 24], sizes = [64, 8], strides = [1, 1]} : vector<64x64xf32> to vector<64x8xf32>
    %19 = vector.shape_cast %18 : vector<64x8xf32> to vector<8x8x8xf32>
    %20 = tpu.concatenate %17, %19 in 0 : vector<8x8x8xf32>, vector<8x8x8xf32> -> vector<16x8x8xf32>
    %21 = vector.extract_strided_slice %10 {offsets = [0, 32], sizes = [64, 8], strides = [1, 1]} : vector<64x64xf32> to vector<64x8xf32>
    %22 = vector.shape_cast %21 : vector<64x8xf32> to vector<8x8x8xf32>
    %23 = vector.extract_strided_slice %10 {offsets = [0, 40], sizes = [64, 8], strides = [1, 1]} : vector<64x64xf32> to vector<64x8xf32>
    %24 = vector.shape_cast %23 : vector<64x8xf32> to vector<8x8x8xf32>
    %25 = tpu.concatenate %22, %24 in 0 : vector<8x8x8xf32>, vector<8x8x8xf32> -> vector<16x8x8xf32>
    "tpu.trace_start"() <{level = 10 : i32, message = "zik,zjk->zij"}> : () -> ()
    %cst_9 = arith.constant dense<0.000000e+00> : vector<16x8x8xf32>
    %26 = tpu.matmul %15, %20, %cst_9 {dimension_numbers = #tpu.dot_dimension_numbers<[2], [2], [1], [1], [0, 0, 0, 1, 1, 1], [0], [0]>} : vector<16x8x8xf32>, vector<16x8x8xf32>, vector<16x8x8xf32> -> vector<16x8x8xf32>
    "tpu.trace_stop"() : () -> ()
    %cst_10 = arith.constant dense<0xFF800000> : vector<16x8xf32>
    %27 = vector.multi_reduction <maximumf>, %26, %cst_10 [2] : vector<16x8x8xf32> to vector<16x8xf32>
    %28 = vector.shape_cast %27 : vector<16x8xf32> to vector<16x8x1xf32>
    %29 = vector.broadcast %28 : vector<16x8x1xf32> to vector<16x8x8xf32>
    %30 = arith.subf %26, %29 : vector<16x8x8xf32>
    %31 = math.exp %30 : vector<16x8x8xf32>
    %cst_11 = arith.constant dense<0.000000e+00> : vector<16x8xf32>
    %32 = vector.multi_reduction <add>, %31, %cst_11 [2] : vector<16x8x8xf32> to vector<16x8xf32>
    %33 = vector.shape_cast %32 : vector<16x8xf32> to vector<16x8x1xf32>
    %34 = tpu.reciprocal %33 {approx = true} : vector<16x8x1xf32> -> vector<16x8x1xf32>
    %35 = vector.broadcast %34 : vector<16x8x1xf32> to vector<16x8x8xf32>
    %36 = arith.mulf %31, %35 : vector<16x8x8xf32>
    "tpu.trace_start"() <{level = 10 : i32, message = "zij,zjd->zid"}> : () -> ()
    %cst_12 = arith.constant dense<0.000000e+00> : vector<16x8x8xf32>
    %37 = tpu.matmul %36, %25, %cst_12 {dimension_numbers = #tpu.dot_dimension_numbers<[2], [1], [1], [2], [0, 0, 0, 1, 1, 2], [0], [0]>} : vector<16x8x8xf32>, vector<16x8x8xf32>, vector<16x8x8xf32> -> vector<16x8x8xf32>
    "tpu.trace_stop"() : () -> ()
    %38 = vector.extract_strided_slice %37 {offsets = [0, 0, 0], sizes = [8, 8, 8], strides = [1, 1, 1]} : vector<16x8x8xf32> to vector<8x8x8xf32>
    %39 = vector.extract_strided_slice %37 {offsets = [8, 0, 0], sizes = [8, 8, 8], strides = [1, 1, 1]} : vector<16x8x8xf32> to vector<8x8x8xf32>
    %40 = tpu.concatenate %38, %39 in 2 : vector<8x8x8xf32>, vector<8x8x8xf32> -> vector<8x8x16xf32>
    %41 = vector.extract_strided_slice %10 {offsets = [0, 48], sizes = [64, 16], strides = [1, 1]} : vector<64x64xf32> to vector<64x16xf32>
    %42 = vector.shape_cast %41 : vector<64x16xf32> to vector<8x8x16xf32>
    %43 = arith.addf %40, %42 : vector<8x8x16xf32>
    %cst_13 = arith.constant 0.000000e+00 : f32
    %44 = vector.broadcast %cst_13 : f32 to vector<8x8x16xf32>
    %45 = arith.maximumf %43, %44 : vector<8x8x16xf32>
    %c1 = arith.constant 1 : index
    %c0_14 = arith.constant 0 : index
    %c0_15 = arith.constant 0 : index
    %46 = vector.load %arg4[%c1, %c0_14, %c0_15] : memref<2x16x64xf32, #tpu.memory_space<vmem>>, vector<1x16x64xf32>
    %47 = vector.shape_cast %46 : vector<1x16x64xf32> to vector<16x64xf32>
    %48 = vector.shape_cast %45 : vector<8x8x16xf32> to vector<64x16xf32>
    %cst_16 = arith.constant dense<0.000000e+00> : vector<64x64xf32>
    %49 = tpu.matmul %48, %47, %cst_16 {dimension_numbers = #tpu.dot_dimension_numbers<[1], [0], [0], [1], [0, 0, 1, 1], [], []>} : vector<64x16xf32>, vector<16x64xf32>, vector<64x64xf32> -> vector<64x64xf32>
    %50 = vector.extract_strided_slice %49 {offsets = [0, 0], sizes = [64, 8], strides = [1, 1]} : vector<64x64xf32> to vector<64x8xf32>
    %51 = vector.shape_cast %50 : vector<64x8xf32> to vector<8x8x8xf32>
    %52 = vector.extract_strided_slice %49 {offsets = [0, 8], sizes = [64, 8], strides = [1, 1]} : vector<64x64xf32> to vector<64x8xf32>
    %53 = vector.shape_cast %52 : vector<64x8xf32> to vector<8x8x8xf32>
    %54 = tpu.concatenate %51, %53 in 0 : vector<8x8x8xf32>, vector<8x8x8xf32> -> vector<16x8x8xf32>
    %55 = vector.extract_strided_slice %49 {offsets = [0, 16], sizes = [64, 8], strides = [1, 1]} : vector<64x64xf32> to vector<64x8xf32>
    %56 = vector.shape_cast %55 : vector<64x8xf32> to vector<8x8x8xf32>
    %57 = vector.extract_strided_slice %49 {offsets = [0, 24], sizes = [64, 8], strides = [1, 1]} : vector<64x64xf32> to vector<64x8xf32>
    %58 = vector.shape_cast %57 : vector<64x8xf32> to vector<8x8x8xf32>
    %59 = tpu.concatenate %56, %58 in 0 : vector<8x8x8xf32>, vector<8x8x8xf32> -> vector<16x8x8xf32>
    %60 = vector.extract_strided_slice %49 {offsets = [0, 32], sizes = [64, 8], strides = [1, 1]} : vector<64x64xf32> to vector<64x8xf32>
    %61 = vector.shape_cast %60 : vector<64x8xf32> to vector<8x8x8xf32>
    %62 = vector.extract_strided_slice %49 {offsets = [0, 40], sizes = [64, 8], strides = [1, 1]} : vector<64x64xf32> to vector<64x8xf32>
    %63 = vector.shape_cast %62 : vector<64x8xf32> to vector<8x8x8xf32>
    %64 = tpu.concatenate %61, %63 in 0 : vector<8x8x8xf32>, vector<8x8x8xf32> -> vector<16x8x8xf32>
    "tpu.trace_start"() <{level = 10 : i32, message = "zik,zjk->zij"}> : () -> ()
    %cst_17 = arith.constant dense<0.000000e+00> : vector<16x8x8xf32>
    %65 = tpu.matmul %54, %59, %cst_17 {dimension_numbers = #tpu.dot_dimension_numbers<[2], [2], [1], [1], [0, 0, 0, 1, 1, 1], [0], [0]>} : vector<16x8x8xf32>, vector<16x8x8xf32>, vector<16x8x8xf32> -> vector<16x8x8xf32>
    "tpu.trace_stop"() : () -> ()
    %cst_18 = arith.constant dense<0xFF800000> : vector<16x8xf32>
    %66 = vector.multi_reduction <maximumf>, %65, %cst_18 [2] : vector<16x8x8xf32> to vector<16x8xf32>
    %67 = vector.shape_cast %66 : vector<16x8xf32> to vector<16x8x1xf32>
    %68 = vector.broadcast %67 : vector<16x8x1xf32> to vector<16x8x8xf32>
    %69 = arith.subf %65, %68 : vector<16x8x8xf32>
    %70 = math.exp %69 : vector<16x8x8xf32>
    %cst_19 = arith.constant dense<0.000000e+00> : vector<16x8xf32>
    %71 = vector.multi_reduction <add>, %70, %cst_19 [2] : vector<16x8x8xf32> to vector<16x8xf32>
    %72 = vector.shape_cast %71 : vector<16x8xf32> to vector<16x8x1xf32>
    %73 = tpu.reciprocal %72 {approx = true} : vector<16x8x1xf32> -> vector<16x8x1xf32>
    %74 = vector.broadcast %73 : vector<16x8x1xf32> to vector<16x8x8xf32>
    %75 = arith.mulf %70, %74 : vector<16x8x8xf32>
    "tpu.trace_start"() <{level = 10 : i32, message = "zij,zjd->zid"}> : () -> ()
    %cst_20 = arith.constant dense<0.000000e+00> : vector<16x8x8xf32>
    %76 = tpu.matmul %75, %64, %cst_20 {dimension_numbers = #tpu.dot_dimension_numbers<[2], [1], [1], [2], [0, 0, 0, 1, 1, 2], [0], [0]>} : vector<16x8x8xf32>, vector<16x8x8xf32>, vector<16x8x8xf32> -> vector<16x8x8xf32>
    "tpu.trace_stop"() : () -> ()
    %77 = vector.extract_strided_slice %76 {offsets = [0, 0, 0], sizes = [8, 8, 8], strides = [1, 1, 1]} : vector<16x8x8xf32> to vector<8x8x8xf32>
    %78 = vector.extract_strided_slice %76 {offsets = [8, 0, 0], sizes = [8, 8, 8], strides = [1, 1, 1]} : vector<16x8x8xf32> to vector<8x8x8xf32>
    %79 = tpu.concatenate %77, %78 in 2 : vector<8x8x8xf32>, vector<8x8x8xf32> -> vector<8x8x16xf32>
    %80 = vector.extract_strided_slice %49 {offsets = [0, 48], sizes = [64, 16], strides = [1, 1]} : vector<64x64xf32> to vector<64x16xf32>
    %81 = vector.shape_cast %80 : vector<64x16xf32> to vector<8x8x16xf32>
    %82 = arith.addf %79, %81 : vector<8x8x16xf32>
    %cst_21 = arith.constant 0.000000e+00 : f32
    %83 = vector.broadcast %cst_21 : f32 to vector<8x8x16xf32>
    %84 = arith.maximumf %82, %83 : vector<8x8x16xf32>
    %85 = vector.shape_cast %84 : vector<8x8x16xf32> to vector<8x128xf32>
    %86 = vector.shape_cast %0 : vector<8x8x16xf32> to vector<8x128xf32>
    %c0_22 = arith.constant 0 : index
    %c0_23 = arith.constant 0 : index
    %87 = vector.load %arg5[%c0_22, %c0_23] : memref<128x32xf32, #tpu.memory_space<vmem>>, vector<128x32xf32>
    %cst_24 = arith.constant dense<0.000000e+00> : vector<8x32xf32>
    %88 = tpu.matmul %86, %87, %cst_24 {dimension_numbers = #tpu.dot_dimension_numbers<[1], [0], [0], [1], [0, 0, 1, 1], [], []>} : vector<8x128xf32>, vector<128x32xf32>, vector<8x32xf32> -> vector<8x32xf32>
    %c0_25 = arith.constant 0 : index
    %c0_26 = arith.constant 0 : index
    %89 = vector.load %arg6[%c0_25, %c0_26] : memref<1x32xf32, #tpu.memory_space<vmem>>, vector<1x32xf32>
    %90 = vector.broadcast %89 : vector<1x32xf32> to vector<8x32xf32>
    %91 = arith.addf %88, %90 : vector<8x32xf32>
    %cst_27 = arith.constant 0.000000e+00 : f32
    %92 = vector.broadcast %cst_27 : f32 to vector<8x32xf32>
    %93 = arith.maximumf %91, %92 : vector<8x32xf32>
    %c0_28 = arith.constant 0 : index
    %c0_29 = arith.constant 0 : index
    %94 = vector.load %arg7[%c0_28, %c0_29] : memref<32x16xf32, #tpu.memory_space<vmem>>, vector<32x16xf32>
    %cst_30 = arith.constant dense<0.000000e+00> : vector<8x16xf32>
    %95 = tpu.matmul %93, %94, %cst_30 {dimension_numbers = #tpu.dot_dimension_numbers<[1], [0], [0], [1], [0, 0, 1, 1], [], []>} : vector<8x32xf32>, vector<32x16xf32>, vector<8x16xf32> -> vector<8x16xf32>
    %c0_31 = arith.constant 0 : index
    %c0_32 = arith.constant 0 : index
    %96 = vector.load %arg8[%c0_31, %c0_32] : memref<1x16xf32, #tpu.memory_space<vmem>>, vector<1x16xf32>
    %97 = vector.broadcast %96 : vector<1x16xf32> to vector<8x16xf32>
    %98 = arith.addf %95, %97 : vector<8x16xf32>
    %cst_33 = arith.constant 0.000000e+00 : f32
    %99 = vector.broadcast %cst_33 : f32 to vector<8x16xf32>
    %100 = arith.maximumf %98, %99 : vector<8x16xf32>
    %c0_34 = arith.constant 0 : index
    %c0_35 = arith.constant 0 : index
    %101 = vector.load %arg9[%c0_34, %c0_35] : memref<1x128xf32, #tpu.memory_space<vmem>>, vector<1x128xf32>
    %102 = vector.broadcast %101 : vector<1x128xf32> to vector<8x128xf32>
    %103 = arith.mulf %85, %102 : vector<8x128xf32>
    %cst_36 = arith.constant dense<0.000000e+00> : vector<8xf32>
    %104 = vector.multi_reduction <add>, %103, %cst_36 [1] : vector<8x128xf32> to vector<8xf32>
    %105 = vector.shape_cast %104 : vector<8xf32> to vector<8x1xf32>
    %106 = arith.addf %6, %105 : vector<8x1xf32>
    %c0_37 = arith.constant 0 : index
    %c0_38 = arith.constant 0 : index
    %107 = vector.load %arg10[%c0_37, %c0_38] : memref<1x16xf32, #tpu.memory_space<vmem>>, vector<1x16xf32>
    %108 = vector.broadcast %107 : vector<1x16xf32> to vector<8x16xf32>
    %109 = arith.mulf %100, %108 : vector<8x16xf32>
    %cst_39 = arith.constant dense<0.000000e+00> : vector<8xf32>
    %110 = vector.multi_reduction <add>, %109, %cst_39 [1] : vector<8x16xf32> to vector<8xf32>
    %111 = vector.shape_cast %110 : vector<8xf32> to vector<8x1xf32>
    %112 = arith.addf %106, %111 : vector<8x1xf32>
    %113 = arith.negf %112 : vector<8x1xf32>
    %114 = math.exp %113 : vector<8x1xf32>
    %cst_40 = arith.constant 1.000000e+00 : f32
    %115 = vector.broadcast %cst_40 : f32 to vector<8x1xf32>
    %116 = arith.addf %115, %114 : vector<8x1xf32>
    %117 = arith.divf %115, %116 : vector<8x1xf32>
    %c0_41 = arith.constant 0 : index
    %c0_42 = arith.constant 0 : index
    %118 = vector.load %arg11[%c0_41, %c0_42] : memref<8x1xf32, #tpu.memory_space<vmem>>, vector<8x1xf32>
    tpu.vector_store %arg11[%c0_41, %c0_42], %117 {strides = array<i32>} : memref<8x1xf32, #tpu.memory_space<vmem>>, vector<8x1xf32>,
    return
  }
  func.func @transform_0(%arg0: i32) -> (i32, i32, i32) {
    %c0_i32 = arith.constant 0 : i32
    %c0_i32_0 = arith.constant 0 : i32
    %c0_i32_1 = arith.constant 0 : i32
    return %arg0, %c0_i32, %c0_i32_0 : i32, i32, i32
  }
  func.func @transform_1(%arg0: i32) -> (i32, i32) {
    %c0_i32 = arith.constant 0 : i32
    %c0_i32_0 = arith.constant 0 : i32
    return %arg0, %c0_i32 : i32, i32
  }
  func.func @transform_2(%arg0: i32) -> i32 {
    %c0_i32 = arith.constant 0 : i32
    %c0_i32_0 = arith.constant 0 : i32
    return %c0_i32 : i32
  }
  func.func @transform_3(%arg0: i32) -> (i32, i32, i32) {
    %c0_i32 = arith.constant 0 : i32
    %c0_i32_0 = arith.constant 0 : i32
    %c0_i32_1 = arith.constant 0 : i32
    %c0_i32_2 = arith.constant 0 : i32
    return %c0_i32, %c0_i32_0, %c0_i32_1 : i32, i32, i32
  }
  func.func @transform_4(%arg0: i32) -> (i32, i32) {
    %c0_i32 = arith.constant 0 : i32
    %c0_i32_0 = arith.constant 0 : i32
    %c0_i32_1 = arith.constant 0 : i32
    return %c0_i32, %c0_i32_0 : i32, i32
  }
  func.func @transform_5(%arg0: i32) -> (i32, i32) {
    %c0_i32 = arith.constant 0 : i32
    %c0_i32_0 = arith.constant 0 : i32
    %c0_i32_1 = arith.constant 0 : i32
    return %c0_i32, %c0_i32_0 : i32, i32
  }
  func.func @transform_6(%arg0: i32) -> (i32, i32) {
    %c0_i32 = arith.constant 0 : i32
    %c0_i32_0 = arith.constant 0 : i32
    %c0_i32_1 = arith.constant 0 : i32
    return %c0_i32, %c0_i32_0 : i32, i32
  }
  func.func @transform_7(%arg0: i32) -> (i32, i32) {
    %c0_i32 = arith.constant 0 : i32
    %c0_i32_0 = arith.constant 0 : i32
    %c0_i32_1 = arith.constant 0 : i32
    return %c0_i32, %c0_i32_0 : i32, i32
  }
  func.func @transform_8(%arg0: i32) -> (i32, i32) {
    %c0_i32 = arith.constant 0 : i32
    %c0_i32_0 = arith.constant 0 : i32
    %c0_i32_1 = arith.constant 0 : i32
    return %c0_i32, %c0_i32_0 : i32, i32
  }
  func.func @transform_9(%arg0: i32) -> (i32, i32) {
    %c0_i32 = arith.constant 0 : i32
    %c0_i32_0 = arith.constant 0 : i32
    %c0_i32_1 = arith.constant 0 : i32
    return %c0_i32, %c0_i32_0 : i32, i32
  }
  func.func @transform_10(%arg0: i32) -> (i32, i32) {
    %c0_i32 = arith.constant 0 : i32
    %c0_i32_0 = arith.constant 0 : i32
    return %arg0, %c0_i32 : i32, i32
  }
}

</mosaic_0001>

<bundles_post_ra>
// kernel: tpu_custom_call.1
= control target key start
LH: loop header
LB: loop body
LE: loop exit
PB: predicated region body
PF: predicated region fallthrough
CT: control target
= control target key end

     0   :  { %vm54_vm0 = vcmask 130048   ;;  %v5745_v0 = vlaneseq  ;;  %v7184_v4 = vmov 1983009808   ;;  %v7186_v45 = vmov 0.0   ;;  %s7188_s13 = smov 112   ;;  %s7189_s14 = smov 96   ;;  %s8567_s3 = inlined_call_operand.vmem [shape: f32[2,16,64], index: 3, kind: input, shape index: {}]   ;;  %s8568_s0 = inlined_call_operand.vmem [shape: f32[8,8,16], index: 0, kind: input, shape index: {}]   ;;  %s8569_s4 = inlined_call_operand.vmem [shape: f32[128,32], index: 4, kind: input, shape index: {}]   ;;  %s8570_s6 = inlined_call_operand.vmem [shape: f32[32,16], index: 6, kind: input, shape index: {}]   ;;  %s8571_s5 = inlined_call_operand.vmem [shape: f32[1,32], index: 5, kind: input, shape index: {}]   ;;  %s8572_s7 = inlined_call_operand.vmem [shape: f32[1,16], index: 7, kind: input, shape index: {}]   ;;  %s8573_s1 = inlined_call_operand.vmem [shape: f32[8,8], index: 1, kind: input, shape index: {}]   ;;  %s8574_s9 = inlined_call_operand.vmem [shape: f32[1,16], index: 9, kind: input, shape index: {}]   ;;  %s8575_s8 = inlined_call_operand.vmem [shape: f32[1,128], index: 8, kind: input, shape index: {}]   ;;  %s8576_s2 = inlined_call_operand.<no memory space> [shape: f32[1], index: 2, kind: input, shape index: {}]   ;;  %s8577_s10 = inlined_call_operand.vmem [shape: f32[8,1], index: 10, kind: output, shape index: {}]  }
   0x1   :  { %v52_v1 = vld [vmem:[%s8567_s3] sm:$0xff]  ;;  %v53_v2 = vld [vmem:[%s8567_s3 + $0x8] sm:$0xff]  ;;  %v5743_v5 = vunpack.c.l.s4 %v7184_v4  ;;  %v38_v7 = vld [vmem:[%s8568_s0 + $0x10] sm:$0xff]  ;;  %vm7187_vm1 = vmmov 0   ;;  %vm45_vm2 = vcmask 64512   ;;  %s7190_s15 = smov 80  }
   0x2   :  { %v36_v3 = vld [vmem:[%s8568_s0] sm:$0xff]  ;;  %v6990_v6 = vpack.c.bf16 %v53_v2, %v52_v1  ;;  %v7266_v8 = vshrl.u32 %v5745_v0, 7  ;;  %v37_v9 = vld [vmem:[%s8568_s0 + $0x8] sm:$0xff]  ;;  %v39_v10 = vld [vmem:[%s8568_s0 + $0x18] sm:$0xff]  ;;  %6599 = vmatprep.mubr.msk.f32.mxu1 %vm54_vm0, %v38_v7  ;;  %s7191_s20 = smov 8   ;;  %s7194_s21 = smov 48  }
   0x3   :  { %6596 = vmatprep.mubr.msk.f32.mxu0 %vm54_vm0, %v36_v3  ;;  %v5744_v11 = vunpack.c.0.s8 %v5743_v5  ;;  %v5917_v12 = vcombine.low %v36_v3, %v38_v7  ;;  %v5918_v13 = vcombine.high %v36_v3, %v38_v7  ;;  %v5933_v14 = vcombine.low %v37_v9, %v39_v10  ;;  %v40_v15 = vld [vmem:[%s8568_s0 + $0x20] sm:$0xff]  ;;  %v42_v16 = vld [vmem:[%s8568_s0 + $0x30] sm:$0xff]  ;;  %v41_v18 = vld [vmem:[%s8568_s0 + $0x28] sm:$0xff]  ;;  %s7195_s22 = smov 64   ;;  %s7196_s23 = smov 16  }
   0x4   :  { %6991 = vmatprep.subr.bf16.mxu0 %v6990_v6  ;;  %7028 = vmatprep.subr.bf16.mxu1 %v6990_v6  ;;  %v5934_v17 = vcombine.high %v37_v9, %v39_v10  ;;  %v5949_v19 = vcombine.low %v40_v15, %v42_v16  ;;  %v5950_v20 = vcombine.high %v40_v15, %v42_v16  ;;  %v43_v21 = vld [vmem:[%s8568_s0 + $0x38] sm:$0xff]  ;;  %s7185_s0 = smov 120   ;;  %vm5905_vm3 = vcmask 261120  }
   0x5   :  { %6993 = vmatpush3.bf16.msra.mxu0 %v6990_v6  ;;  %7029 = vmatpush3.bf16.msra.mxu1 %v6990_v6  ;;  %v7288_v22 = vsub.s32 %v5744_v11, %v7266_v8  ;;  %v5965_v23 = vcombine.low %v41_v18, %v43_v21  ;;  %v5966_v24 = vcombine.high %v41_v18, %v43_v21  ;;  %vm5907_vm4 = vcmask 392192  }
   0x6   :  { %6608 = vmatprep.subr.mxu1 %v7186_v45  ;;  %6628 = vmatprep.subr.mxu0 %v7186_v45  ;;  %vm5909_vm5 = vcmask 523264   ;;  %vm5911_vm6 = vcmask 654336   ;;  %vm5913_vm7 = vcmask 785408   ;;  %vm5915_vm8 = vcmask 916480  }
   0x7   :  { %v7291_v25 = vrot.slane %v5917_v12, %v7288_v22  ;;  %v7294_v26 = vrot.slane %v5918_v13, %v7288_v22  ;;  %v7297_v27 = vrot.slane %v5933_v14, %v7288_v22  ;;  %v7300_v28 = vrot.slane %v5934_v17, %v7288_v22 }
   0x8   :  { %6597 = vmatmul.mubr.msk.f32.vlgmr.msra.gmra.mrb[0].mxu0 %vm54_vm0, %v37_v9  ;;  %6600 = vmatmul.mubr.msk.f32.vlgmr.msra.gmra.mrb[0].mxu1 %vm54_vm0, %v39_v10  ;;  %v7305_v29 = vrot.slane %v5949_v19, %v7288_v22  ;;  %v7308_v30 = vrot.slane %v5950_v20, %v7288_v22  ;;  %v7311_v31 = vrot.slane %v5965_v23, %v7288_v22  ;;  %vm6296_vm9 = vcmask 7168  }
   0x9   :  { %v5982_v33 = vcombine.high %v7291_v25, %v7297_v27  ;;  %v5997_v34 = vcombine.low %v7294_v26, %v7300_v28  ;;  %6602 = vmatprep.mubr.msk.f32.mxu1 %vm54_vm0, %v40_v15  ;;  %v7323_v36 = vrot.slane %v5966_v24, %v7288_v22  ;;  %6630 = vmatprep.mubr.msk.f32.mxu0 %vm7187_vm1, %v7186_v45 }
   0xa   :  { %v6014_v38 = vcombine.high %v7305_v29, %v7311_v31 }
   0xb   :  { %v6029_v39 = vcombine.low %v7308_v30, %v7323_v36 }
   0xc   :  { %6603 = vmatmul.mubr.msk.f32.gmra.mrb[2].mxu1 %vm54_vm0, %v41_v18 }
   0xd   :  { %6605 = vmatprep.mubr.msk.f32.mxu1 %vm54_vm0, %v42_v16 }
  0x10   :  { %6606 = vmatmul.mubr.msk.f32.gmra.mrb[4].mxu1 %vm54_vm0, %v43_v21 }
  0x11   :  { %6610 = vmatprep.mubr.msk.f32.mxu1 %vm7187_vm1, %v7186_v45 }
  0xdb   :  { %v7336_v41 = vpop.f32.mrb[0].mxu0  ;;  %v7338_v42 = vpop.f32.mrb[0].mxu1 }
  0xdc   :  { %v7340_v43 = vpop.f32.mrb[1].mxu0  ;;  %v7342_v44 = vpop.f32.mrb[1].mxu1 }
  0xdd   :  { %196 = vrot.lane.b32.xlu1 %v7342_v44, %s7185_s0  ;;  %192 = vrot.lane.b32.xlu0 %v7340_v43, %s7185_s0 }
  0xdf   :  { %v7350_v46 = vpop.f32.mrb[2].mxu1 }
  0xe0   :  { %v7352_v47 = vpop.f32.mrb[3].mxu1 }
  0xe1   :  { %198 = vrot.lane.b32.xlu1 %v7338_v42, %s7185_s0  ;;  %194 = vrot.lane.b32.xlu0 %v7336_v41, %s7185_s0 }
  0xe3   :  { %v7362_v48 = vpop.f32.mrb[4].mxu1 }
  0xe4   :  { %v7364_v49 = vpop.f32.mrb[5].mxu1 }
  0xe5   :  { %202 = vrot.lane.b32.xlu1 %v7350_v46, %s7185_s0  ;;  %200 = vrot.lane.b32.xlu0 %v7352_v47, %s7185_s0 }
  0xe9   :  { %206 = vrot.lane.b32.xlu1 %v7362_v48, %s7185_s0  ;;  %204 = vrot.lane.b32.xlu0 %v7364_v49, %s7185_s0 }
  0xed   :  { %284 = vrot.lane.b32.xlu1 %v7336_v41, %s7188_s13  ;;  %208 = vrot.lane.b32.xlu0 %v7340_v43, %s7188_s13 }
  0xf1   :  { %436 = vrot.lane.b32.xlu1 %v7338_v42, %s7188_s13  ;;  %360 = vrot.lane.b32.xlu0 %v7342_v44, %s7188_s13 }
  0xf5   :  { %588 = vrot.lane.b32.xlu1 %v7350_v46, %s7188_s13  ;;  %512 = vrot.lane.b32.xlu0 %v7352_v47, %s7188_s13 }
  0xf9   :  { %664 = vrot.lane.b32.xlu0 %v7364_v49, %s7188_s13  ;;  %740 = vrot.lane.b32.xlu1 %v7362_v48, %s7188_s13 }
 0x14f   :  { %v7390_v50 = vpop.permute.xlu1 %196  ;;  %v7392_v51 = vpop.permute.xlu0 %192 }
 0x150   :  { %816 = vrot.lane.b32.xlu0 %v7392_v51, %s7188_s13 }
 0x153   :  { %v7396_v52 = vpop.permute.xlu1 %198  ;;  %v7398_v53 = vpop.permute.xlu0 %194 }
 0x154   :  { %968 = vrot.lane.b32.xlu0 %v7390_v50, %s7188_s13  ;;  %892 = vrot.lane.b32.xlu1 %v7398_v53, %s7188_s13 }
 0x157   :  { %v7404_v54 = vpop.permute.xlu1 %202  ;;  %v7406_v55 = vpop.permute.xlu0 %200 }
 0x158   :  { %1044 = vrot.lane.b32.xlu1 %v7396_v52, %s7188_s13  ;;  %1120 = vrot.lane.b32.xlu0 %v7406_v55, %s7188_s13 }
 0x15b   :  { %v7412_v56 = vpop.permute.xlu0 %204  ;;  %v7418_v57 = vpop.permute.xlu1 %206 }
 0x15c   :  { %1196 = vrot.lane.b32.xlu1 %v7404_v54, %s7188_s13  ;;  %1272 = vrot.lane.b32.xlu0 %v7412_v56, %s7188_s13 }
 0x15f   :  { %v209_v58 = vpop.permute.xlu0 %208  ;;  %v285_v59 = vpop.permute.xlu1 %284 }
 0x160   :  { %1348 = vrot.lane.b32.xlu1 %v7418_v57, %s7188_s13  ;;  %1676 = vrot.lane.b32.xlu0 %v7336_v41, %s7189_s14 }
 0x161   :  { %6609 = vmatpush3.xpose.msk.msra.mxu1 %vm45_vm2, %v209_v58 }
 0x162   :  { %6613 = vmatprep.subr.mxu1 %v7186_v45 }
 0x163   :  { %v361_v60 = vpop.permute.xlu0 %360  ;;  %v437_v62 = vpop.permute.xlu1 %436 }
 0x164   :  { %6611 = vmatmul.mubr.msk.f32.vlgmr.msra.gmra.mrb[6].mxu1 %vm45_vm2, %v7340_v43  ;;  %1600 = vrot.lane.b32.xlu1 %v7340_v43, %s7189_s14 }
 0x165   :  { %1828 = vrot.lane.b32.xlu0 %v7338_v42, %s7189_s14  ;;  %6614 = vmatpush3.xpose.msk.msra.mxu1 %vm45_vm2, %v285_v59 }
 0x166   :  { %6615 = vmatprep.mubr.msk.f32.mxu1 %vm7187_vm1, %v7186_v45  ;;  %6618 = vmatprep.subr.mxu1 %v7186_v45 }
 0x167   :  { %v513_v61 = vpop.permute.xlu0 %512  ;;  %v589_v0 = vpop.permute.xlu1 %588 }
 0x168   :  { %6616 = vmatmul.mubr.msk.f32.vlgmr.msra.gmra.mrb[8].mxu1 %vm45_vm2, %v7336_v41  ;;  %1752 = vrot.lane.b32.xlu1 %v7342_v44, %s7189_s14 }
 0x169   :  { %2056 = vrot.lane.b32.xlu0 %v7364_v49, %s7189_s14  ;;  %6619 = vmatpush3.xpose.msk.msra.mxu1 %vm45_vm2, %v361_v60 }
 0x16a   :  { %6629 = vmatpush3.xpose.msk.msra.mxu0 %vm45_vm2, %v513_v61  ;;  %6620 = vmatprep.mubr.msk.f32.mxu1 %vm7187_vm1, %v7186_v45 }
 0x16b   :  { %6623 = vmatprep.subr.mxu1 %v7186_v45  ;;  %6638 = vmatprep.subr.mxu0 %v7186_v45  ;;  %v665_v63 = vpop.permute.xlu0 %664  ;;  %v741_v1 = vpop.permute.xlu1 %740 }
 0x16c   :  { %6621 = vmatmul.mubr.msk.f32.vlgmr.msra.gmra.mrb[10].mxu1 %vm45_vm2, %v7342_v44  ;;  %1904 = vrot.lane.b32.xlu1 %v7352_v47, %s7189_s14 }
 0x16d   :  { %6631 = vmatmul.mubr.msk.f32.vlgmr.msra.gmra.mrb[2].mxu0 %vm45_vm2, %v7352_v47  ;;  %2208 = vrot.lane.b32.xlu0 %v7392_v51, %s7189_s14 }
 0x16e   :  { %6624 = vmatpush3.xpose.msk.msra.mxu1 %vm45_vm2, %v437_v62  ;;  %6639 = vmatpush3.xpose.msk.msra.mxu0 %vm45_vm2, %v665_v63 }
 0x16f   :  { %6625 = vmatprep.mubr.msk.f32.mxu1 %vm7187_vm1, %v7186_v45  ;;  %6640 = vmatprep.mubr.msk.f32.mxu0 %vm7187_vm1, %v7186_v45 }
 0x170   :  { %6633 = vmatprep.subr.mxu1 %v7186_v45  ;;  %1980 = vrot.lane.b32.xlu1 %v7350_v46, %s7189_s14 }
 0x171   :  { %6626 = vmatmul.mubr.msk.f32.vlgmr.msra.gmra.mrb[12].mxu1 %vm45_vm2, %v7338_v42  ;;  %6641 = vmatmul.mubr.msk.f32.vlgmr.msra.gmra.mrb[4].mxu0 %vm45_vm2, %v7364_v49 }
 0x172   :  { %6634 = vmatpush3.xpose.msk.msra.mxu1 %vm45_vm2, %v589_v0  ;;  %6635 = vmatprep.mubr.msk.f32.mxu1 %vm7187_vm1, %v7186_v45 }
 0x173   :  { %6643 = vmatprep.subr.mxu1 %v7186_v45  ;;  %6648 = vmatprep.subr.mxu0 %v7186_v45 }
 0x174   :  { %2132 = vrot.lane.b32.xlu1 %v7362_v48, %s7189_s14  ;;  %6650 = vmatprep.mubr.msk.f32.mxu0 %vm7187_vm1, %v7186_v45 }
 0x175   :  { %6636 = vmatmul.mubr.msk.f32.vlgmr.msra.gmra.mrb[14].mxu1 %vm45_vm2, %v7350_v46 }
 0x176   :  { %6644 = vmatpush3.xpose.msk.msra.mxu1 %vm45_vm2, %v741_v1  ;;  %6645 = vmatprep.mubr.msk.f32.mxu1 %vm7187_vm1, %v7186_v45 }
 0x177   :  { %6653 = vmatprep.subr.mxu1 %v7186_v45 }
 0x178   :  { %2284 = vrot.lane.b32.xlu1 %v7398_v53, %s7189_s14 }
 0x179   :  { %6646 = vmatmul.mubr.msk.f32.vlgmr.msra.gmra.mrb[16].mxu1 %vm45_vm2, %v7362_v48 }
 0x17a   :  { %6655 = vmatprep.mubr.msk.f32.mxu1 %vm7187_vm1, %v7186_v45 }
 0x1c2   :  { %v817_v2 = vpop.permute.xlu0 %816 }
 0x1c3   :  { %6649 = vmatpush3.xpose.msk.msra.mxu0 %vm45_vm2, %v817_v2 }
 0x1c4   :  { %6658 = vmatprep.subr.mxu0 %v7186_v45 }
 0x1c6   :  { %v893_v3 = vpop.permute.xlu1 %892  ;;  %6651 = vmatmul.mubr.msk.f32.vlgmr.msra.gmra.mrb[6].mxu0 %vm45_vm2, %v7392_v51  ;;  %v969_v4 = vpop.permute.xlu0 %968 }
 0x1c7   :  { %6654 = vmatpush3.xpose.msk.msra.mxu1 %vm45_vm2, %v893_v3  ;;  %6659 = vmatpush3.xpose.msk.msra.mxu0 %vm45_vm2, %v969_v4 }
 0x1c8   :  { %6660 = vmatprep.mubr.msk.f32.mxu0 %vm7187_vm1, %v7186_v45  ;;  %6663 = vmatprep.subr.mxu1 %v7186_v45 }
 0x1c9   :  { %6668 = vmatprep.subr.mxu0 %v7186_v45 }
 0x1ca   :  { %v1045_v5 = vpop.permute.xlu1 %1044  ;;  %6656 = vmatmul.mubr.msk.f32.vlgmr.msra.gmra.mrb[18].mxu1 %vm45_vm2, %v7398_v53  ;;  %6661 = vmatmul.mubr.msk.f32.vlgmr.msra.gmra.mrb[8].mxu0 %vm45_vm2, %v7390_v50  ;;  %v1121_v6 = vpop.permute.xlu0 %1120 }
 0x1cb   :  { %6664 = vmatpush3.xpose.msk.msra.mxu1 %vm45_vm2, %v1045_v5  ;;  %6669 = vmatpush3.xpose.msk.msra.mxu0 %vm45_vm2, %v1121_v6 }
 0x1cc   :  { %6665 = vmatprep.mubr.msk.f32.mxu1 %vm7187_vm1, %v7186_v45  ;;  %6670 = vmatprep.mubr.msk.f32.mxu0 %vm7187_vm1, %v7186_v45 }
 0x1cd   :  { %6673 = vmatprep.subr.mxu1 %v7186_v45  ;;  %6678 = vmatprep.subr.mxu0 %v7186_v45 }
 0x1ce   :  { %v1197_v7 = vpop.permute.xlu1 %1196  ;;  %6666 = vmatmul.mubr.msk.f32.vlgmr.msra.gmra.mrb[20].mxu1 %vm45_vm2, %v7396_v52  ;;  %6671 = vmatmul.mubr.msk.f32.vlgmr.msra.gmra.mrb[10].mxu0 %vm45_vm2, %v7406_v55  ;;  %v1273_v9 = vpop.permute.xlu0 %1272 }
 0x1cf   :  { %6674 = vmatpush3.xpose.msk.msra.mxu1 %vm45_vm2, %v1197_v7  ;;  %6679 = vmatpush3.xpose.msk.msra.mxu0 %vm45_vm2, %v1273_v9 }
 0x1d0   :  { %6675 = vmatprep.mubr.msk.f32.mxu1 %vm7187_vm1, %v7186_v45  ;;  %6680 = vmatprep.mubr.msk.f32.mxu0 %vm7187_vm1, %v7186_v45 }
 0x1d1   :  { %6683 = vmatprep.subr.mxu1 %v7186_v45  ;;  %6688 = vmatprep.subr.mxu0 %v7186_v45 }
 0x1d2   :  { %v1349_v10 = vpop.permute.xlu1 %1348  ;;  %6676 = vmatmul.mubr.msk.f32.vlgmr.msra.gmra.mrb[22].mxu1 %vm45_vm2, %v7404_v54  ;;  %6681 = vmatmul.mubr.msk.f32.vlgmr.msra.gmra.mrb[12].mxu0 %vm45_vm2, %v7412_v56  ;;  %v1677_v11 = vpop.permute.xlu0 %1676 }
 0x1d3   :  { %6684 = vmatpush3.xpose.msk.msra.mxu1 %vm45_vm2, %v1349_v10  ;;  %6685 = vmatprep.mubr.msk.f32.mxu1 %vm7187_vm1, %v7186_v45 }
 0x1d4   :  { %6693 = vmatprep.subr.mxu1 %v7186_v45  ;;  %6690 = vmatprep.mubr.msk.f32.mxu0 %vm7187_vm1, %v7186_v45 }
 0x1d6   :  { %v1601_v12 = vpop.permute.xlu1 %1600  ;;  %6686 = vmatmul.mubr.msk.f32.vlgmr.msra.gmra.mrb[24].mxu1 %vm45_vm2, %v7418_v57 }
 0x1d7   :  { %6689 = vmatpush3.msra.mxu0 %v1601_v12  ;;  %6694 = vmatpush3.msra.mxu1 %v1677_v11 }
 0x1d8   :  { %6695 = vmatprep.mubr.msk.f32.mxu1 %vm7187_vm1, %v7186_v45  ;;  %6703 = vmatprep.subr.mxu1 %v7186_v45 }
 0x1d9   :  { %6698 = vmatprep.subr.mxu0 %v7186_v45 }
 0x237   :  { %v7540_v13 = vpop.f32.mrb[6].mxu1 }
 0x238   :  { %v6612_v14 = vpop.f32.mrb[7].mxu1  ;;  %v1424_v15 = vsel %vm45_vm2, %v7540_v13, -inf }
 0x239   :  { %1425 = vmax.xlane.f32.xlu0 %v1424_v15 }
 0x23b   :  { %v7544_v16 = vpop.f32.mrb[8].mxu1 }
 0x23c   :  { %v6617_v17 = vpop.f32.mrb[9].mxu1  ;;  %v1427_v18 = vsel %vm45_vm2, %v7544_v16, -inf }
 0x23d   :  { %1428 = vmax.xlane.f32.xlu1 %v1427_v18 }
 0x23f   :  { %v7548_v19 = vpop.f32.mrb[10].mxu1 }
 0x240   :  { %v7550_v20 = vpop.f32.mrb[2].mxu0  ;;  %v6622_v21 = vpop.f32.mrb[11].mxu1  ;;  %v1430_v23 = vsel %vm45_vm2, %v7548_v19, -inf }
 0x241   :  { %v6632_v24 = vpop.f32.mrb[3].mxu0  ;;  %1431 = vmax.xlane.f32.xlu0 %v1430_v23  ;;  %v1436_v51 = vsel %vm45_vm2, %v7550_v20, -inf }
 0x242   :  { %1437 = vmax.xlane.f32.xlu1 %v1436_v51 }
 0x244   :  { %v7556_v53 = vpop.f32.mrb[12].mxu1  ;;  %v7558_v58 = vpop.f32.mrb[4].mxu0 }
 0x245   :  { %v6627_v59 = vpop.f32.mrb[13].mxu1  ;;  %v6642_v60 = vpop.f32.mrb[5].mxu0  ;;  %v1433_v61 = vsel %vm45_vm2, %v7556_v53, -inf  ;;  %v1442_v62 = vsel %vm45_vm2, %v7558_v58, -inf }
 0x246   :  { %1434 = vmax.xlane.f32.xlu0 %v1433_v61  ;;  %1443 = vmax.xlane.f32.xlu1 %v1442_v62 }
 0x248   :  { %v7564_v63 = vpop.f32.mrb[14].mxu1 }
 0x249   :  { %v6637_v0 = vpop.f32.mrb[15].mxu1  ;;  %v1439_v1 = vsel %vm45_vm2, %v7564_v63, -inf }
 0x24a   :  { %1440 = vmax.xlane.f32.xlu0 %v1439_v1 }
 0x24c   :  { %v7568_v2 = vpop.f32.mrb[16].mxu1 }
 0x24d   :  { %v6647_v3 = vpop.f32.mrb[17].mxu1  ;;  %v1445_v4 = vsel %vm45_vm2, %v7568_v2, -inf }
 0x24e   :  { %1446 = vmax.xlane.f32.xlu0 %v1445_v4 }
 0x299   :  { %v7572_v5 = vpop.f32.mrb[6].mxu0 }
 0x29a   :  { %v6652_v6 = vpop.f32.mrb[7].mxu0  ;;  %v1448_v7 = vsel %vm45_vm2, %v7572_v5, -inf }
 0x29b   :  { %1449 = vmax.xlane.f32.xlu1 %v1448_v7  ;;  %v7602_v6 = vpop.permute.xlu1 %1752 }
 0x29d   :  { %v7576_v9 = vpop.f32.mrb[18].mxu1  ;;  %v7578_v10 = vpop.f32.mrb[8].mxu0 }
 0x29e   :  { %v6657_v11 = vpop.f32.mrb[19].mxu1  ;;  %v6662_v12 = vpop.f32.mrb[9].mxu0  ;;  %v1451_v14 = vsel %vm45_vm2, %v7576_v9, -inf  ;;  %v1454_v15 = vsel %vm45_vm2, %v7578_v10, -inf }
 0x29f   :  { %1452 = vmax.xlane.f32.xlu0 %v1451_v14  ;;  %1455 = vmax.xlane.f32.xlu1 %v1454_v15  ;;  %v7606_v7 = vpop.permute.xlu1 %1904  ;;  %v7608_v11 = vpop.permute.xlu0 %1828 }
 0x2a1   :  { %v7584_v17 = vpop.f32.mrb[20].mxu1  ;;  %v7586_v18 = vpop.f32.mrb[10].mxu0 }
 0x2a2   :  { %v6667_v21 = vpop.f32.mrb[21].mxu1  ;;  %v6672_v23 = vpop.f32.mrb[11].mxu0  ;;  %v1457_v24 = vsel %vm45_vm2, %v7584_v17, -inf  ;;  %v1460_v51 = vsel %vm45_vm2, %v7586_v18, -inf }
 0x2a3   :  { %1458 = vmax.xlane.f32.xlu0 %v1457_v24  ;;  %1461 = vmax.xlane.f32.xlu1 %v1460_v51  ;;  %v7610_v12 = vpop.permute.xlu1 %1980  ;;  %v7612_v14 = vpop.permute.xlu0 %2056 }
 0x2a5   :  { %v7592_v59 = vpop.f32.mrb[22].mxu1  ;;  %v7594_v60 = vpop.f32.mrb[12].mxu0 }
 0x2a6   :  { %v6677_v61 = vpop.f32.mrb[23].mxu1  ;;  %v6682_v62 = vpop.f32.mrb[13].mxu0  ;;  %v1463_v0 = vsel %vm45_vm2, %v7592_v59, -inf }
 0x2a7   :  { %1464 = vmax.xlane.f32.xlu0 %v1463_v0  ;;  %v7614_v15 = vpop.permute.xlu1 %2132  ;;  %v7620_v21 = vpop.permute.xlu0 %2208 }
 0x2a9   :  { %v7598_v1 = vpop.f32.mrb[24].mxu1 }
 0x2aa   :  { %v6687_v3 = vpop.f32.mrb[25].mxu1  ;;  %v1469_v4 = vsel %vm45_vm2, %v7598_v1, -inf }
 0x2ab   :  { %1470 = vmax.xlane.f32.xlu0 %v1469_v4  ;;  %v7622_v23 = vpop.permute.xlu1 %2284 }
 0x2b4   :  { %2436 = vrot.lane.b32.xlu1 %v7396_v52, %s7189_s14 }
 0x2c1   :  { %2360 = vrot.lane.b32.xlu0 %v7390_v50, %s7189_s14  ;;  %v1466_v50 = vsel %vm45_vm2, %v7594_v60, -inf }
 0x2c5   :  { %2512 = vrot.lane.b32.xlu0 %v7406_v55, %s7189_s14 }
 0x2c6   :  { %v1426_v52 = vpop.xlane.xlu0 %1425 }
 0x2ca   :  { %v1429_v24 = vpop.xlane.xlu1 %1428 }
 0x2cb   :  { %v1473_v51 = vsub.f32 %v7544_v16, %v1429_v24 }
 0x2cd   :  { %v1490_v62 = vmul.f32 1.442695, %v1473_v51 }
 0x2ce   :  { %v1432_v61 = vpop.xlane.xlu0 %1431 }
 0x2cf   :  { %7052 = vpow2.f32 %v1490_v62  ;;  %v1438_v62 = vpop.xlane.xlu1 %1437 }
 0x2d3   :  { %v1435_v0 = vpop.xlane.xlu0 %1434 }
 0x2d4   :  { %v1475_v3 = vsub.f32 %v7556_v53, %v1435_v0 }
 0x2d6   :  { %v1494_v4 = vmul.f32 1.442695, %v1475_v3  ;;  %v1476_v3 = vsub.f32 %v7550_v20, %v1438_v62 }
 0x2d7   :  { %v1441_v37 = vpop.xlane.xlu0 %1440 }
 0x2d8   :  { %v1477_v55 = vsub.f32 %v7564_v63, %v1441_v37  ;;  %1467 = vmax.xlane.f32.xlu1 %v1466_v50  ;;  %7054 = vpow2.f32 %v1494_v4  ;;  %v1496_v4 = vmul.f32 1.442695, %v1476_v3  ;;  %v1444_v50 = vpop.xlane.xlu1 %1443 }
 0x2d9   :  { %v7630_v24 = vpop.eup %7052 }
 0x2da   :  { %v1498_v32 = vmul.f32 1.442695, %v1477_v55  ;;  %v1523_v53 = vsel %vm45_vm2, %v7630_v24, 0.0 }
 0x2db   :  { %v1447_v40 = vpop.xlane.xlu0 %1446 }
 0x2dc   :  { %v1479_v35 = vsub.f32 %v7568_v2, %v1447_v40  ;;  %7056 = vpow2.f32 %v1498_v32  ;;  %v1472_v2 = vsub.f32 %v7540_v13, %v1426_v52 }
 0x2de   :  { %v1502_v16 = vmul.f32 1.442695, %v1479_v35  ;;  %v1488_v0 = vmul.f32 1.442695, %v1472_v2 }
 0x2e0   :  { %7058 = vpow2.f32 %v1502_v16  ;;  %v1478_v16 = vsub.f32 %v7558_v58, %v1444_v50 }
 0x2e1   :  { %7060 = vpow2.f32 %v1488_v0 }
 0x2e2   :  { %v7634_v51 = vpop.eup %7054  ;;  %7062 = vpow2.f32 %v1496_v4 }
 0x2e3   :  { %v1529_v37 = vsel %vm45_vm2, %v7634_v51, 0.0 }
 0x2e4   :  { %1524 = vadd.xlane.f32.xlu0 %v1523_v53  ;;  %v1500_v53 = vmul.f32 1.442695, %v1478_v16 }
 0x2e6   :  { %v7638_v63 = vpop.eup %7056 }
 0x2e7   :  { %v1535_v32 = vsel %vm45_vm2, %v7638_v63, 0.0 }
 0x2e8   :  { %1530 = vadd.xlane.f32.xlu0 %v1529_v37 }
 0x2e9   :  { %2588 = vrot.lane.b32.xlu1 %v7404_v54, %s7189_s14  ;;  %v1474_v54 = vsub.f32 %v7548_v19, %v1432_v61 }
 0x2ea   :  { %v7644_v35 = vpop.eup %7058 }
 0x2eb   :  { %v1541_v40 = vsel %vm45_vm2, %v7644_v35, 0.0  ;;  %v1492_v55 = vmul.f32 1.442695, %v1474_v54  ;;  %v7652_v37 = vpop.eup %7060 }
 0x2ec   :  { %1536 = vadd.xlane.f32.xlu0 %v1535_v32  ;;  %v1520_v13 = vsel %vm45_vm2, %v7652_v37, 0.0  ;;  %v7656_v52 = vpop.eup %7062 }
 0x2ed   :  { %7064 = vpow2.f32 %v1492_v55  ;;  %v1532_v20 = vsel %vm45_vm2, %v7656_v52, 0.0 }
 0x2ee   :  { %7066 = vpow2.f32 %v1500_v53 }
 0x2f0   :  { %1542 = vadd.xlane.f32.xlu0 %v1541_v40 }
 0x2f7   :  { %v7660_v19 = vpop.eup %7064 }
 0x2f8   :  { %v1526_v58 = vsel %vm45_vm2, %v7660_v19, 0.0  ;;  %v7664_v61 = vpop.eup %7066 }
 0x2f9   :  { %v1538_v32 = vsel %vm45_vm2, %v7664_v61, 0.0 }
 0x30d   :  { %1521 = vadd.xlane.f32.xlu1 %v1520_v13 }
 0x311   :  { %1533 = vadd.xlane.f32.xlu1 %v1532_v20 }
 0x315   :  { %1527 = vadd.xlane.f32.xlu1 %v1526_v58 }
 0x319   :  { %1539 = vadd.xlane.f32.xlu1 %v1538_v32 }
 0x328   :  { %v1450_v40 = vpop.xlane.xlu1 %1449 }
 0x329   :  { %v1480_v2 = vsub.f32 %v7572_v5, %v1450_v40 }
 0x32b   :  { %v1504_v62 = vmul.f32 1.442695, %v1480_v2 }
 0x32c   :  { %v1456_v0 = vpop.xlane.xlu1 %1455  ;;  %v1453_v3 = vpop.xlane.xlu0 %1452 }
 0x32d   :  { %7068 = vpow2.f32 %v1504_v62  ;;  %v1482_v4 = vsub.f32 %v7578_v10, %v1456_v0  ;;  %v1481_v54 = vsub.f32 %v7576_v9, %v1453_v3 }
 0x32f   :  { %v1508_v50 = vmul.f32 1.442695, %v1482_v4  ;;  %v1506_v55 = vmul.f32 1.442695, %v1481_v54 }
 0x330   :  { %v1462_v16 = vpop.xlane.xlu1 %1461  ;;  %v1459_v53 = vpop.xlane.xlu0 %1458 }
 0x331   :  { %7070 = vpow2.f32 %v1508_v50  ;;  %v1484_v13 = vsub.f32 %v7586_v18, %v1462_v16  ;;  %v1483_v20 = vsub.f32 %v7584_v17, %v1459_v53 }
 0x332   :  { %7072 = vpow2.f32 %v1506_v55 }
 0x333   :  { %v1512_v58 = vmul.f32 1.442695, %v1484_v13  ;;  %v1510_v5 = vmul.f32 1.442695, %v1483_v20 }
 0x334   :  { %v1465_v32 = vpop.xlane.xlu0 %1464 }
 0x335   :  { %7074 = vpow2.f32 %v1512_v58  ;;  %v1485_v40 = vsub.f32 %v7592_v59, %v1465_v32  ;;  %v7705_v58 = vpop.permute.xlu1 %2436 }
 0x336   :  { %7076 = vpow2.f32 %v1510_v5 }
 0x337   :  { %v7674_v10 = vpop.eup %7068  ;;  %v1514_v9 = vmul.f32 1.442695, %v1485_v40 }
 0x338   :  { %v1471_v2 = vpop.xlane.xlu0 %1470  ;;  %v1544_v62 = vsel %vm45_vm2, %v7674_v10, 0.0 }
 0x339   :  { %7078 = vpow2.f32 %v1514_v9  ;;  %v1487_v18 = vsub.f32 %v7598_v1, %v1471_v2  ;;  %1545 = vadd.xlane.f32.xlu1 %v1544_v62 }
 0x33b   :  { %v7679_v17 = vpop.eup %7070  ;;  %v1518_v0 = vmul.f32 1.442695, %v1487_v18 }
 0x33c   :  { %v7681_v3 = vpop.eup %7072  ;;  %v1550_v59 = vsel %vm45_vm2, %v7679_v17, 0.0  ;;  %v7710_v40 = vpop.permute.xlu0 %2360 }
 0x33d   :  { %7080 = vpow2.f32 %v1518_v0  ;;  %1551 = vadd.xlane.f32.xlu1 %v1550_v59  ;;  %v1547_v4 = vsel %vm45_vm2, %v7681_v3, 0.0 }
 0x33e   :  { %1548 = vadd.xlane.f32.xlu0 %v1547_v4 }
 0x33f   :  { %v7687_v54 = vpop.eup %7074 }
 0x340   :  { %v7689_v50 = vpop.eup %7076  ;;  %v1556_v1 = vsel %vm45_vm2, %v7687_v54, 0.0 }
 0x341   :  { %1557 = vadd.xlane.f32.xlu1 %v1556_v1  ;;  %v1553_v55 = vsel %vm45_vm2, %v7689_v50, 0.0 }
 0x342   :  { %1554 = vadd.xlane.f32.xlu0 %v1553_v55 }
 0x343   :  { %v7695_v16 = vpop.eup %7078 }
 0x344   :  { %v1559_v53 = vsel %vm45_vm2, %v7695_v16, 0.0 }
 0x346   :  { %1560 = vadd.xlane.f32.xlu0 %v1559_v53 }
 0x347   :  { %v7699_v13 = vpop.eup %7080 }
 0x348   :  { %v1565_v20 = vsel %vm45_vm2, %v7699_v13, 0.0 }
 0x34a   :  { %1566 = vadd.xlane.f32.xlu0 %v1565_v20 }
 0x360   :  { %2664 = vrot.lane.b32.xlu0 %v7412_v56, %s7189_s14  ;;  %v7716_v56 = vpop.permute.xlu0 %2512 }
 0x364   :  { %2856 = vrot.lane.b32.xlu0 %v7340_v43, %s7190_s15 }
 0x365   :  { %v1468_v5 = vpop.xlane.xlu1 %1467 }
 0x366   :  { %v1486_v32 = vsub.f32 %v7594_v60, %v1468_v5 }
 0x368   :  { %v1516_v9 = vmul.f32 1.442695, %v1486_v32  ;;  %2860 = vrot.lane.b32.xlu0 %v7342_v44, %s7190_s15 }
 0x36a   :  { %7082 = vpow2.f32 %v1516_v9 }
 0x36c   :  { %2864 = vrot.lane.b32.xlu0 %v7352_v47, %s7190_s15 }
 0x371   :  { %v1525_v2 = vpop.xlane.xlu0 %1524 }
 0x372   :  { %7084 = vrcp.f32 %v1525_v2 }
 0x374   :  { %v7718_v62 = vpop.eup %7082 }
 0x375   :  { %v1531_v43 = vpop.xlane.xlu0 %1530  ;;  %v1562_v60 = vsel %vm45_vm2, %v7718_v62, 0.0 }
 0x376   :  { %7086 = vrcp.f32 %v1531_v43  ;;  %1563 = vadd.xlane.f32.xlu1 %v1562_v60 }
 0x379   :  { %v1537_v18 = vpop.xlane.xlu0 %1536 }
 0x37a   :  { %7088 = vrcp.f32 %v1537_v18 }
 0x37c   :  { %v7085_v0 = vpop.eup %7084 }
 0x37d   :  { %v1543_v44 = vpop.xlane.xlu0 %1542  ;;  %v1585_v59 = vmul.f32 %v7085_v0, %v7630_v24 }
 0x37e   :  { %7090 = vrcp.f32 %v1543_v44 }
 0x37f   :  { %6696 = vmatmul.mubr.msk.f32.vlgmr.msra.gmra.mrb[26].mxu1 %vm45_vm2, %v1585_v59 }
 0x380   :  { %v7087_v47 = vpop.eup %7086  ;;  %6704 = vmatpush3.msra.mxu1 %v7608_v11  ;;  %6705 = vmatprep.mubr.msk.f32.mxu1 %vm7187_vm1, %v7186_v45 }
 0x381   :  { %6713 = vmatprep.subr.mxu1 %v7186_v45  ;;  %v1587_v4 = vmul.f32 %v7087_v47, %v7634_v51 }
 0x383   :  { %6706 = vmatmul.mubr.msk.f32.vlgmr.msra.gmra.mrb[28].mxu1 %vm45_vm2, %v1587_v4 }
 0x384   :  { %v7089_v1 = vpop.eup %7088  ;;  %6714 = vmatpush3.msra.mxu1 %v7610_v12  ;;  %6715 = vmatprep.mubr.msk.f32.mxu1 %vm7187_vm1, %v7186_v45 }
 0x385   :  { %6723 = vmatprep.subr.mxu1 %v7186_v45  ;;  %v1589_v24 = vmul.f32 %v7089_v1, %v7638_v63 }
 0x387   :  { %2740 = vrot.lane.b32.xlu1 %v7418_v57, %s7189_s14  ;;  %6716 = vmatmul.mubr.msk.f32.vlgmr.msra.gmra.mrb[30].mxu1 %vm45_vm2, %v1589_v24  ;;  %v7754_v57 = vpop.permute.xlu1 %2588 }
 0x388   :  { %v7091_v11 = vpop.eup %7090  ;;  %6724 = vmatpush3.msra.mxu1 %v7614_v15  ;;  %6725 = vmatprep.mubr.msk.f32.mxu1 %vm7187_vm1, %v7186_v45 }
 0x389   :  { %6733 = vmatprep.subr.mxu1 %v7186_v45  ;;  %v1591_v12 = vmul.f32 %v7091_v11, %v7644_v35 }
 0x38b   :  { %2858 = vrot.lane.b32.xlu1 %v7336_v41, %s7190_s15  ;;  %6726 = vmatmul.mubr.msk.f32.vlgmr.msra.gmra.mrb[32].mxu1 %vm45_vm2, %v1591_v12 }
 0x38c   :  { %6734 = vmatpush3.msra.mxu1 %v7622_v23  ;;  %6735 = vmatprep.mubr.msk.f32.mxu1 %vm7187_vm1, %v7186_v45 }
 0x38d   :  { %6743 = vmatprep.subr.mxu1 %v7186_v45 }
 0x38f   :  { %2862 = vrot.lane.b32.xlu1 %v7338_v42, %s7190_s15 }
 0x393   :  { %2866 = vrot.lane.b32.xlu1 %v7350_v46, %s7190_s15 }
 0x39a   :  { %v1522_v15 = vpop.xlane.xlu1 %1521 }
 0x39b   :  { %7092 = vrcp.f32 %v1522_v15 }
 0x39e   :  { %v1534_v41 = vpop.xlane.xlu1 %1533 }
 0x3a2   :  { %v1528_v51 = vpop.xlane.xlu1 %1527 }
 0x3a3   :  { %7094 = vrcp.f32 %v1528_v51 }
 0x3a4   :  { %7096 = vrcp.f32 %v1534_v41 }
 0x3a5   :  { %v7093_v63 = vpop.eup %7092 }
 0x3a6   :  { %v1540_v23 = vpop.xlane.xlu1 %1539  ;;  %v1584_v35 = vmul.f32 %v7093_v63, %v7652_v37 }
 0x3a7   :  { %7098 = vrcp.f32 %v1540_v23 }
 0x3a8   :  { %6691 = vmatmul.mubr.msk.f32.vlgmr.msra.gmra.mrb[14].mxu0 %vm45_vm2, %v1584_v35 }
 0x3a9   :  { %6699 = vmatpush3.msra.mxu0 %v7602_v6  ;;  %6700 = vmatprep.mubr.msk.f32.mxu0 %vm7187_vm1, %v7186_v45 }
 0x3aa   :  { %6708 = vmatprep.subr.mxu0 %v7186_v45 }
 0x3ad   :  { %v7095_v42 = vpop.eup %7094 }
 0x3ae   :  { %v1586_v46 = vmul.f32 %v7095_v42, %v7660_v19  ;;  %v7097_v55 = vpop.eup %7096 }
 0x3af   :  { %v1588_v6 = vmul.f32 %v7097_v55, %v7656_v52  ;;  %v6359_v55 = vld [vmem:[%s8567_s3 + $0x18] sm:$0xff] }
 0x3b0   :  { %6701 = vmatmul.mubr.msk.f32.vlgmr.msra.gmra.mrb[16].mxu0 %vm45_vm2, %v1586_v46  ;;  %v6358_v46 = vld [vmem:[%s8567_s3 + $0x10] sm:$0xff]  ;;  %s7193_s3 = smov 32  }
 0x3b1   :  { %6709 = vmatpush3.msra.mxu0 %v7606_v7  ;;  %6710 = vmatprep.mubr.msk.f32.mxu0 %vm7187_vm1, %v7186_v45  ;;  %v7099_v37 = vpop.eup %7098 }
 0x3b2   :  { %6718 = vmatprep.subr.mxu0 %v7186_v45  ;;  %v1590_v19 = vmul.f32 %v7099_v37, %v7664_v61 }
 0x3b4   :  { %6711 = vmatmul.mubr.msk.f32.vlgmr.msra.gmra.mrb[18].mxu0 %vm45_vm2, %v1588_v6  ;;  %v6994_v6 = vpack.c.bf16 %v6359_v55, %v6358_v46 }
 0x3b5   :  { %6719 = vmatpush3.msra.mxu0 %v7612_v14  ;;  %6720 = vmatprep.mubr.msk.f32.mxu0 %vm7187_vm1, %v7186_v45 }
 0x3b6   :  { %6728 = vmatprep.subr.mxu0 %v7186_v45 }
 0x3b8   :  { %6721 = vmatmul.mubr.msk.f32.vlgmr.msra.gmra.mrb[20].mxu0 %vm45_vm2, %v1590_v19 }
 0x3b9   :  { %6729 = vmatpush3.msra.mxu0 %v7620_v21  ;;  %6730 = vmatprep.mubr.msk.f32.mxu0 %vm7187_vm1, %v7186_v45 }
 0x3ba   :  { %6738 = vmatprep.subr.mxu0 %v7186_v45 }
 0x3c6   :  { %v1546_v7 = vpop.xlane.xlu1 %1545 }
 0x3c7   :  { %7100 = vrcp.f32 %v1546_v7 }
 0x3ca   :  { %v1552_v52 = vpop.xlane.xlu1 %1551 }
 0x3cb   :  { %7102 = vrcp.f32 %v1552_v52  ;;  %v1549_v14 = vpop.xlane.xlu0 %1548 }
 0x3cc   :  { %7104 = vrcp.f32 %v1549_v14 }
 0x3ce   :  { %v1558_v53 = vpop.xlane.xlu1 %1557 }
 0x3cf   :  { %7106 = vrcp.f32 %v1558_v53  ;;  %v1555_v20 = vpop.xlane.xlu0 %1554 }
 0x3d0   :  { %7108 = vrcp.f32 %v1555_v20 }
 0x3d1   :  { %v7101_v61 = vpop.eup %7100 }
 0x3d2   :  { %v1592_v5 = vmul.f32 %v7101_v61, %v7674_v10 }
 0x3d3   :  { %v1561_v32 = vpop.xlane.xlu0 %1560 }
 0x3d4   :  { %7110 = vrcp.f32 %v1561_v32  ;;  %6731 = vmatmul.mubr.msk.f32.vlgmr.msra.gmra.mrb[22].mxu0 %vm45_vm2, %v1592_v5 }
 0x3d5   :  { %v7103_v21 = vpop.eup %7102  ;;  %6739 = vmatpush3.msra.mxu0 %v7710_v40  ;;  %6740 = vmatprep.mubr.msk.f32.mxu0 %vm7187_vm1, %v7186_v45 }
 0x3d6   :  { %v7105_v9 = vpop.eup %7104  ;;  %6748 = vmatprep.subr.mxu0 %v7186_v45  ;;  %v1594_v2 = vmul.f32 %v7103_v21, %v7679_v17 }
 0x3d7   :  { %v1567_v43 = vpop.xlane.xlu0 %1566  ;;  %v1593_v60 = vmul.f32 %v7105_v9, %v7681_v3 }
 0x3d8   :  { %6741 = vmatmul.mubr.msk.f32.vlgmr.msra.gmra.mrb[24].mxu0 %vm45_vm2, %v1594_v2  ;;  %7112 = vrcp.f32 %v1567_v43 }
 0x3d9   :  { %v7107_v10 = vpop.eup %7106  ;;  %6736 = vmatmul.mubr.msk.f32.vlgmr.msra.gmra.mrb[34].mxu1 %vm45_vm2, %v1593_v60  ;;  %6749 = vmatpush3.msra.mxu0 %v7716_v56 }
 0x3da   :  { %v7109_v18 = vpop.eup %7108  ;;  %6744 = vmatpush3.msra.mxu1 %v7705_v58  ;;  %6745 = vmatprep.mubr.msk.f32.mxu1 %vm7187_vm1, %v7186_v45  ;;  %v1596_v40 = vmul.f32 %v7107_v10, %v7687_v54 }
 0x3db   :  { %v2665_v0 = vpop.permute.xlu0 %2664  ;;  %6750 = vmatprep.mubr.msk.f32.mxu0 %vm7187_vm1, %v7186_v45  ;;  %6753 = vmatprep.subr.mxu1 %v7186_v45  ;;  %v1595_v17 = vmul.f32 %v7109_v18, %v7689_v50 }
 0x3dc   :  { %6758 = vmatprep.subr.mxu0 %v7186_v45  ;;  %6751 = vmatmul.mubr.msk.f32.vlgmr.msra.gmra.mrb[26].mxu0 %vm45_vm2, %v1596_v40 }
 0x3dd   :  { %6746 = vmatmul.mubr.msk.f32.vlgmr.msra.gmra.mrb[36].mxu1 %vm45_vm2, %v1595_v17  ;;  %6759 = vmatpush3.msra.mxu0 %v2665_v0 }
 0x3de   :  { %v7111_v3 = vpop.eup %7110  ;;  %6754 = vmatpush3.msra.mxu1 %v7754_v57  ;;  %6755 = vmatprep.mubr.msk.f32.mxu1 %vm7187_vm1, %v7186_v45 }
 0x3df   :  { %v1597_v54 = vmul.f32 %v7111_v3, %v7695_v16  ;;  %6763 = vmatprep.subr.mxu1 %v7186_v45  ;;  %6760 = vmatprep.mubr.msk.f32.mxu0 %vm7187_vm1, %v7186_v45  ;;  %v2857_v18 = vpop.permute.xlu0 %2856 }
 0x3e0   :  { %6995 = vmatprep.subr.bf16.mxu0 %v6994_v6 }
 0x3e1   :  { %6756 = vmatmul.mubr.msk.f32.vlgmr.msra.gmra.mrb[38].mxu1 %vm45_vm2, %v1597_v54 }
 0x3e2   :  { %6765 = vmatprep.mubr.msk.f32.mxu1 %vm7187_vm1, %v7186_v45  ;;  %v7113_v58 = vpop.eup %7112 }
 0x3e3   :  { %v1599_v44 = vmul.f32 %v7113_v58, %v7699_v13  ;;  %v2861_v0 = vpop.permute.xlu0 %2860 }
 0x3e7   :  { %v2865_v3 = vpop.permute.xlu0 %2864 }
 0x403   :  { %v1564_v50 = vpop.xlane.xlu1 %1563 }
 0x404   :  { %7114 = vrcp.f32 %v1564_v50 }
 0x407   :  { %v2741_v56 = vpop.permute.xlu1 %2740 }
 0x408   :  { %6764 = vmatpush3.msra.mxu1 %v2741_v56 }
 0x409   :  { %6766 = vmatmul.mubr.msk.f32.vlgmr.msra.gmra.mrb[40].mxu1 %vm45_vm2, %v1599_v44  ;;  %6784 = vmatprep.subr.mxu1 %v7186_v45 }
 0x40a   :  { %6786 = vmatprep.mubr.msk.f32.mxu1 %vm7187_vm1, %v7186_v45 }
 0x40b   :  { %v2859_v40 = vpop.permute.xlu1 %2858 }
 0x40e   :  { %v7115_v16 = vpop.eup %7114 }
 0x40f   :  { %v1598_v59 = vmul.f32 %v7115_v16, %v7718_v62  ;;  %v2863_v17 = vpop.permute.xlu1 %2862 }
 0x411   :  { %6761 = vmatmul.mubr.msk.f32.vlgmr.msra.gmra.mrb[28].mxu0 %vm45_vm2, %v1598_v59 }
 0x412   :  { %6997 = vmatpush3.bf16.msra.mxu0 %v6994_v6 }
 0x413   :  { %6804 = vmatprep.subr.mxu0 %v7186_v45  ;;  %v2867_v50 = vpop.permute.xlu1 %2866 }
 0x452   :  { %v7819_v47 = vpop.f32.mrb[26].mxu1 }
 0x453   :  { %v6697_v4 = vpop.f32.mrb[27].mxu1 }
 0x456   :  { %v7821_v1 = vpop.f32.mrb[28].mxu1 }
 0x457   :  { %v6707_v24 = vpop.f32.mrb[29].mxu1 }
 0x45a   :  { %v7823_v13 = vpop.f32.mrb[30].mxu1 }
 0x45b   :  { %v6717_v11 = vpop.f32.mrb[31].mxu1 }
 0x45e   :  { %v7825_v12 = vpop.f32.mrb[32].mxu1 }
 0x45f   :  { %v6727_v57 = vpop.f32.mrb[33].mxu1 }
 0x47b   :  { %v1672_v15 = vpop.f32.mrb[14].mxu0 }
 0x47c   :  { %v6692_v41 = vpop.f32.mrb[15].mxu0 }
 0x483   :  { %v1824_v51 = vpop.f32.mrb[16].mxu0 }
 0x484   :  { %v6702_v63 = vpop.f32.mrb[17].mxu0 }
 0x487   :  { %v1976_v23 = vpop.f32.mrb[18].mxu0 }
 0x488   :  { %v6712_v62 = vpop.f32.mrb[19].mxu0 }
 0x48b   :  { %v7827_v35 = vpop.f32.mrb[20].mxu0 }
 0x48c   :  { %v6722_v42 = vpop.f32.mrb[21].mxu0 }
 0x4a7   :  { %v2280_v37 = vpop.f32.mrb[22].mxu0 }
 0x4a8   :  { %v6732_v19 = vpop.f32.mrb[23].mxu0  ;;  %2824 = vrot.lane.b32.xlu0 %v2280_v37, %s7191_s20 }
 0x4ab   :  { %v2432_v7 = vpop.f32.mrb[24].mxu0 }
 0x4ac   :  { %v2356_v52 = vpop.f32.mrb[34].mxu1  ;;  %2828 = vrot.lane.b32.xlu0 %v2432_v7, %s7191_s20  ;;  %v6742_v14 = vpop.f32.mrb[25].mxu0 }
 0x4ad   :  { %2826 = vrot.lane.b32.xlu1 %v2356_v52, %s7191_s20  ;;  %v6737_v53 = vpop.f32.mrb[35].mxu1 }
 0x4af   :  { %v2584_v20 = vpop.f32.mrb[26].mxu0 }
 0x4b0   :  { %v2508_v61 = vpop.f32.mrb[36].mxu1  ;;  %2832 = vrot.lane.b32.xlu0 %v2584_v20, %s7191_s20  ;;  %v6752_v5 = vpop.f32.mrb[27].mxu0 }
 0x4b1   :  { %2830 = vrot.lane.b32.xlu1 %v2508_v61, %s7191_s20  ;;  %v6747_v32 = vpop.f32.mrb[37].mxu1 }
 0x4b4   :  { %v2660_v21 = vpop.f32.mrb[38].mxu1 }
 0x4b5   :  { %2834 = vrot.lane.b32.xlu1 %v2660_v21, %s7191_s20  ;;  %v6757_v9 = vpop.f32.mrb[39].mxu1 }
 0x4dc   :  { %v2812_v2 = vpop.f32.mrb[40].mxu1 }
 0x4dd   :  { %2838 = vrot.lane.b32.xlu1 %v2812_v2, %s7191_s20  ;;  %v6767_v43 = vpop.f32.mrb[41].mxu1 }
 0x4e1   :  { %2870 = vrot.lane.b32.xlu1 %v7362_v48, %s7190_s15 }
 0x4e4   :  { %v2736_v60 = vpop.f32.mrb[28].mxu0 }
 0x4e5   :  { %2836 = vrot.lane.b32.xlu0 %v2736_v60, %s7191_s20  ;;  %v6762_v10 = vpop.f32.mrb[29].mxu0 }
 0x4e9   :  { %2868 = vrot.lane.b32.xlu0 %v7364_v49, %s7190_s15 }
 0x51a   :  { %v2825_v54 = vpop.permute.xlu0 %2824 }
 0x51b   :  { %v2848_v58 = vsel %vm45_vm2, %v1672_v15, %v2825_v54 }
 0x51c   :  { %v2880_v56 = vadd.f32 %v2857_v18, %v2848_v58 }
 0x51e   :  { %v2888_v44 = vmax.f32 %v2880_v56, 0.0  ;;  %v2829_v16 = vpop.permute.xlu0 %2828 }
 0x51f   :  { %v2827_v48 = vpop.permute.xlu1 %2826  ;;  %v2850_v59 = vsel %vm45_vm2, %v1824_v51, %v2829_v16 }
 0x520   :  { %v2849_v4 = vsel %vm45_vm2, %v7819_v47, %v2827_v48  ;;  %v2882_v24 = vadd.f32 %v2861_v0, %v2850_v59  ;;  %6772 = vmatprep.mubr.msk.f32.mxu0 %vm54_vm0, %v2888_v44 }
 0x521   :  { %v2881_v49 = vadd.f32 %v2859_v40, %v2849_v4 }
 0x522   :  { %v2890_v11 = vmax.f32 %v2882_v24, 0.0  ;;  %v2833_v57 = vpop.permute.xlu0 %2832 }
 0x523   :  { %v2889_v41 = vmax.f32 %v2881_v49, 0.0  ;;  %v2831_v63 = vpop.permute.xlu1 %2830  ;;  %v2852_v62 = vsel %vm45_vm2, %v1976_v23, %v2833_v57 }
 0x524   :  { %v2851_v15 = vsel %vm45_vm2, %v7821_v1, %v2831_v63  ;;  %v2884_v42 = vadd.f32 %v2865_v3, %v2852_v62 }
 0x525   :  { %v2883_v46 = vadd.f32 %v2863_v17, %v2851_v15  ;;  %6773 = vmatmul.mubr.msk.f32.vlgmr.msra.gmra.mrb[30].mxu0 %vm54_vm0, %v2889_v41 }
 0x526   :  { %v2892_v51 = vmax.f32 %v2884_v42, 0.0  ;;  %6775 = vmatprep.mubr.msk.f32.mxu0 %vm54_vm0, %v2890_v11 }
 0x527   :  { %v2891_v47 = vmax.f32 %v2883_v46, 0.0  ;;  %v2835_v55 = vpop.permute.xlu1 %2834 }
 0x528   :  { %v2853_v6 = vsel %vm45_vm2, %v7823_v13, %v2835_v55 }
 0x529   :  { %v2885_v37 = vadd.f32 %v2867_v50, %v2853_v6  ;;  %6776 = vmatmul.mubr.msk.f32.gmra.mrb[32].mxu0 %vm54_vm0, %v2891_v47 }
 0x52a   :  { %6778 = vmatprep.mubr.msk.f32.mxu0 %vm54_vm0, %v2892_v51 }
 0x52b   :  { %v2893_v23 = vmax.f32 %v2885_v37, 0.0 }
 0x52d   :  { %6779 = vmatmul.mubr.msk.f32.gmra.mrb[34].mxu0 %vm54_vm0, %v2893_v23 }
 0x54f   :  { %v2839_v1 = vpop.permute.xlu1 %2838 }
 0x550   :  { %v2855_v52 = vsel %vm45_vm2, %v7825_v12, %v2839_v1 }
 0x553   :  { %v2871_v7 = vpop.permute.xlu1 %2870 }
 0x554   :  { %v2887_v14 = vadd.f32 %v2871_v7, %v2855_v52 }
 0x556   :  { %v2895_v5 = vmax.f32 %v2887_v14, 0.0 }
 0x557   :  { %v2837_v19 = vpop.permute.xlu0 %2836 }
 0x558   :  { %v2854_v53 = vsel %vm45_vm2, %v7827_v35, %v2837_v19 }
 0x55b   :  { %v2869_v20 = vpop.permute.xlu0 %2868 }
 0x55c   :  { %v2886_v13 = vadd.f32 %v2869_v20, %v2854_v53 }
 0x55e   :  { %v2894_v61 = vmax.f32 %v2886_v13, 0.0 }
 0x560   :  { %6781 = vmatprep.mubr.msk.f32.mxu0 %vm54_vm0, %v2894_v61 }
 0x561   :  { %6782 = vmatmul.mubr.msk.f32.gmra.mrb[36].mxu0 %vm54_vm0, %v2895_v5 }
 0x562   :  { %6806 = vmatprep.mubr.msk.f32.mxu0 %vm7187_vm1, %v7186_v45 }
 0x5f8   :  { %v7871_v32 = vpop.f32.mrb[30].mxu0 }
 0x5f9   :  { %v7873_v21 = vpop.f32.mrb[31].mxu0 }
 0x5fa   :  { %3036 = vrot.lane.b32.xlu0 %v7873_v21, %s7185_s0 }
 0x5fc   :  { %v7877_v12 = vpop.f32.mrb[32].mxu0 }
 0x5fd   :  { %v7879_v35 = vpop.f32.mrb[33].mxu0 }
 0x5fe   :  { %3040 = vrot.lane.b32.xlu1 %v7879_v35, %s7185_s0 }
 0x600   :  { %v7883_v9 = vpop.f32.mrb[34].mxu0 }
 0x601   :  { %v7885_v2 = vpop.f32.mrb[35].mxu0 }
 0x602   :  { %3044 = vrot.lane.b32.xlu0 %v7885_v2, %s7185_s0 }
 0x606   :  { %3052 = vrot.lane.b32.xlu0 %v7873_v21, %s7188_s13 }
 0x60a   :  { %3204 = vrot.lane.b32.xlu0 %v7879_v35, %s7188_s13 }
 0x634   :  { %v7893_v43 = vpop.f32.mrb[36].mxu0 }
 0x635   :  { %v7895_v60 = vpop.f32.mrb[37].mxu0 }
 0x636   :  { %3508 = vrot.lane.b32.xlu0 %v7895_v60, %s7188_s13  ;;  %3048 = vrot.lane.b32.xlu1 %v7895_v60, %s7185_s0 }
 0x63a   :  { %3128 = vrot.lane.b32.xlu1 %v7871_v32, %s7188_s13 }
 0x63e   :  { %3356 = vrot.lane.b32.xlu1 %v7885_v2, %s7188_s13 }
 0x66c   :  { %v7905_v10 = vpop.permute.xlu0 %3036 }
 0x66d   :  { %3660 = vrot.lane.b32.xlu1 %v7905_v10, %s7188_s13 }
 0x670   :  { %v7909_v18 = vpop.permute.xlu1 %3040 }
 0x671   :  { %3812 = vrot.lane.b32.xlu0 %v7909_v18, %s7188_s13 }
 0x674   :  { %v7913_v40 = vpop.permute.xlu0 %3044 }
 0x675   :  { %3964 = vrot.lane.b32.xlu1 %v7913_v40, %s7188_s13 }
 0x678   :  { %v3053_v0 = vpop.permute.xlu0 %3052 }
 0x679   :  { %3038 = vrot.lane.b32.xlu1 %v7871_v32, %s7185_s0  ;;  %6785 = vmatpush3.xpose.msk.msra.mxu1 %vm45_vm2, %v3053_v0 }
 0x67a   :  { %6789 = vmatprep.subr.mxu1 %v7186_v45 }
 0x67c   :  { %6787 = vmatmul.mubr.msk.f32.vlgmr.msra.gmra.mrb[42].mxu1 %vm45_vm2, %v7873_v21  ;;  %v3205_v54 = vpop.permute.xlu0 %3204 }
 0x67d   :  { %3046 = vrot.lane.b32.xlu1 %v7883_v9, %s7185_s0  ;;  %6791 = vmatprep.mubr.msk.f32.mxu1 %vm7187_vm1, %v7186_v45 }
 0x681   :  { %3280 = vrot.lane.b32.xlu1 %v7877_v12, %s7188_s13 }
 0x685   :  { %3584 = vrot.lane.b32.xlu1 %v7893_v43, %s7188_s13 }
 0x6a8   :  { %v7931_v17 = vpop.permute.xlu1 %3048  ;;  %v3509_v58 = vpop.permute.xlu0 %3508 }
 0x6a9   :  { %4116 = vrot.lane.b32.xlu0 %v7931_v17, %s7188_s13 }
 0x6ac   :  { %v3129_v3 = vpop.permute.xlu1 %3128 }
 0x6ad   :  { %3042 = vrot.lane.b32.xlu0 %v7877_v12, %s7185_s0  ;;  %6790 = vmatpush3.xpose.msk.msra.mxu1 %vm45_vm2, %v3129_v3 }
 0x6ae   :  { %6794 = vmatprep.subr.mxu1 %v7186_v45 }
 0x6b0   :  { %v3357_v50 = vpop.permute.xlu1 %3356  ;;  %6792 = vmatmul.mubr.msk.f32.vlgmr.msra.gmra.mrb[44].mxu1 %vm45_vm2, %v7871_v32 }
 0x6b1   :  { %3050 = vrot.lane.b32.xlu0 %v7893_v43, %s7185_s0  ;;  %6795 = vmatpush3.xpose.msk.msra.mxu1 %vm45_vm2, %v3205_v54 }
 0x6b2   :  { %6805 = vmatpush3.xpose.msk.msra.mxu0 %vm45_vm2, %v3357_v50  ;;  %6796 = vmatprep.mubr.msk.f32.mxu1 %vm7187_vm1, %v7186_v45 }
 0x6b3   :  { %6814 = vmatprep.subr.mxu0 %v7186_v45  ;;  %6799 = vmatprep.subr.mxu1 %v7186_v45 }
 0x6b4   :  { %6797 = vmatmul.mubr.msk.f32.vlgmr.msra.gmra.mrb[46].mxu1 %vm45_vm2, %v7879_v35 }
 0x6b5   :  { %6807 = vmatmul.mubr.msk.f32.vlgmr.msra.gmra.mrb[38].mxu0 %vm45_vm2, %v7885_v2  ;;  %3432 = vrot.lane.b32.xlu0 %v7883_v9, %s7188_s13 }
 0x6b6   :  { %6815 = vmatpush3.xpose.msk.msra.mxu0 %vm45_vm2, %v3509_v58  ;;  %6816 = vmatprep.mubr.msk.f32.mxu0 %vm7187_vm1, %v7186_v45 }
 0x6b7   :  { %6824 = vmatprep.subr.mxu0 %v7186_v45  ;;  %6801 = vmatprep.mubr.msk.f32.mxu1 %vm7187_vm1, %v7186_v45 }
 0x6b9   :  { %6817 = vmatmul.mubr.msk.f32.vlgmr.msra.gmra.mrb[40].mxu0 %vm45_vm2, %v7895_v60 }
 0x6ba   :  { %6826 = vmatprep.mubr.msk.f32.mxu0 %vm7187_vm1, %v7186_v45 }
 0x6df   :  { %v3661_v56 = vpop.permute.xlu1 %3660 }
 0x6e0   :  { %6825 = vmatpush3.xpose.msk.msra.mxu0 %vm45_vm2, %v3661_v56 }
 0x6e1   :  { %6834 = vmatprep.subr.mxu0 %v7186_v45 }
 0x6e3   :  { %6827 = vmatmul.mubr.msk.f32.vlgmr.msra.gmra.mrb[42].mxu0 %vm45_vm2, %v7905_v10  ;;  %v3813_v44 = vpop.permute.xlu0 %3812 }
 0x6e4   :  { %6835 = vmatpush3.xpose.msk.msra.mxu0 %vm45_vm2, %v3813_v44  ;;  %6836 = vmatprep.mubr.msk.f32.mxu0 %vm7187_vm1, %v7186_v45 }
 0x6e5   :  { %6844 = vmatprep.subr.mxu0 %v7186_v45 }
 0x6e7   :  { %v3965_v16 = vpop.permute.xlu1 %3964  ;;  %6837 = vmatmul.mubr.msk.f32.vlgmr.msra.gmra.mrb[44].mxu0 %vm45_vm2, %v7909_v18 }
 0x6e8   :  { %6845 = vmatpush3.xpose.msk.msra.mxu0 %vm45_vm2, %v3965_v16  ;;  %6846 = vmatprep.mubr.msk.f32.mxu0 %vm7187_vm1, %v7186_v45 }
 0x6e9   :  { %6854 = vmatprep.subr.mxu0 %v7186_v45 }
 0x6eb   :  { %v7979_v48 = vpop.permute.xlu1 %3038  ;;  %6847 = vmatmul.mubr.msk.f32.vlgmr.msra.gmra.mrb[46].mxu0 %vm45_vm2, %v7913_v40 }
 0x6ec   :  { %3736 = vrot.lane.b32.xlu0 %v7979_v48, %s7188_s13  ;;  %6856 = vmatprep.mubr.msk.f32.mxu0 %vm7187_vm1, %v7186_v45 }
 0x6ef   :  { %v7987_v59 = vpop.permute.xlu1 %3046 }
 0x6f0   :  { %4040 = vrot.lane.b32.xlu0 %v7987_v59, %s7188_s13 }
 0x6f3   :  { %v3281_v4 = vpop.permute.xlu1 %3280 }
 0x6f4   :  { %6800 = vmatpush3.xpose.msk.msra.mxu1 %vm45_vm2, %v3281_v4 }
 0x6f5   :  { %6809 = vmatprep.subr.mxu1 %v7186_v45 }
 0x6f7   :  { %6802 = vmatmul.mubr.msk.f32.vlgmr.msra.gmra.mrb[48].mxu1 %vm45_vm2, %v7877_v12  ;;  %v3585_v41 = vpop.permute.xlu1 %3584 }
 0x6f8   :  { %6811 = vmatprep.mubr.msk.f32.mxu1 %vm7187_vm1, %v7186_v45 }
 0x71b   :  { %v4117_v24 = vpop.permute.xlu0 %4116 }
 0x71c   :  { %6855 = vmatpush3.xpose.msk.msra.mxu0 %vm45_vm2, %v4117_v24 }
 0x71d   :  { %6864 = vmatprep.subr.mxu0 %v7186_v45 }
 0x71f   :  { %6857 = vmatmul.mubr.msk.f32.vlgmr.msra.gmra.mrb[48].mxu0 %vm45_vm2, %v7931_v17  ;;  %v8001_v49 = vpop.permute.xlu0 %3042 }
 0x720   :  { %3888 = vrot.lane.b32.xlu1 %v8001_v49, %s7188_s13  ;;  %6866 = vmatprep.mubr.msk.f32.mxu0 %vm7187_vm1, %v7186_v45 }
 0x723   :  { %v8007_v11 = vpop.permute.xlu0 %3050 }
 0x724   :  { %4192 = vrot.lane.b32.xlu1 %v8007_v11, %s7188_s13 }
 0x727   :  { %v3433_v57 = vpop.permute.xlu0 %3432 }
 0x728   :  { %6810 = vmatpush3.xpose.msk.msra.mxu1 %vm45_vm2, %v3433_v57 }
 0x729   :  { %6819 = vmatprep.subr.mxu1 %v7186_v45 }
 0x72b   :  { %6812 = vmatmul.mubr.msk.f32.vlgmr.msra.gmra.mrb[50].mxu1 %vm45_vm2, %v7883_v9 }
 0x72c   :  { %6820 = vmatpush3.xpose.msk.msra.mxu1 %vm45_vm2, %v3585_v41  ;;  %6821 = vmatprep.mubr.msk.f32.mxu1 %vm7187_vm1, %v7186_v45 }
 0x72d   :  { %6829 = vmatprep.subr.mxu1 %v7186_v45 }
 0x72f   :  { %6822 = vmatmul.mubr.msk.f32.vlgmr.msra.gmra.mrb[52].mxu1 %vm45_vm2, %v7893_v43 }
 0x730   :  { %6831 = vmatprep.mubr.msk.f32.mxu1 %vm7187_vm1, %v7186_v45 }
 0x74f   :  { %v3124_v63 = vpop.f32.mrb[42].mxu1 }
 0x750   :  { %v6788_v62 = vpop.f32.mrb[43].mxu1  ;;  %v4268_v15 = vsel %vm45_vm2, %v3124_v63, -inf }
 0x751   :  { %4269 = vmax.xlane.f32.xlu0 %v4268_v15 }
 0x75e   :  { %v3737_v42 = vpop.permute.xlu0 %3736 }
 0x75f   :  { %6830 = vmatpush3.xpose.msk.msra.mxu1 %vm45_vm2, %v3737_v42 }
 0x760   :  { %6839 = vmatprep.subr.mxu1 %v7186_v45 }
 0x762   :  { %6832 = vmatmul.mubr.msk.f32.vlgmr.msra.gmra.mrb[54].mxu1 %vm45_vm2, %v7979_v48  ;;  %v4041_v53 = vpop.permute.xlu0 %4040 }
 0x763   :  { %6841 = vmatprep.mubr.msk.f32.mxu1 %vm7187_vm1, %v7186_v45 }
 0x783   :  { %v8030_v46 = vpop.f32.mrb[44].mxu1 }
 0x784   :  { %v6793_v51 = vpop.f32.mrb[45].mxu1  ;;  %v4271_v44 = vsel %vm45_vm2, %v8030_v46, -inf }
 0x787   :  { %v8032_v47 = vpop.f32.mrb[46].mxu1 }
 0x788   :  { %v8034_v55 = vpop.f32.mrb[38].mxu0  ;;  %v6798_v6 = vpop.f32.mrb[47].mxu1  ;;  %v4274_v37 = vsel %vm45_vm2, %v8032_v47, -inf }
 0x789   :  { %v6808_v23 = vpop.f32.mrb[39].mxu0  ;;  %v4280_v1 = vsel %vm45_vm2, %v8034_v55, -inf  ;;  %4275 = vmax.xlane.f32.xlu1 %v4274_v37 }
 0x78a   :  { %4281 = vmax.xlane.f32.xlu0 %v4280_v1 }
 0x78c   :  { %v8040_v19 = vpop.f32.mrb[40].mxu0 }
 0x78d   :  { %v6818_v7 = vpop.f32.mrb[41].mxu0  ;;  %v4286_v52 = vsel %vm45_vm2, %v8040_v19, -inf }
 0x78e   :  { %4287 = vmax.xlane.f32.xlu0 %v4286_v52 }
 0x792   :  { %v3889_v14 = vpop.permute.xlu1 %3888 }
 0x793   :  { %6840 = vmatpush3.xpose.msk.msra.mxu1 %vm45_vm2, %v3889_v14  ;;  %v7192_v14 = vmov 1934713408  }
 0x794   :  { %6849 = vmatprep.subr.mxu1 %v7186_v45 }
 0x796   :  { %6842 = vmatmul.mubr.msk.f32.vlgmr.msra.gmra.mrb[56].mxu1 %vm45_vm2, %v8001_v49  ;;  %v4193_v20 = vpop.permute.xlu1 %4192 }
 0x797   :  { %6850 = vmatpush3.xpose.msk.msra.mxu1 %vm45_vm2, %v4041_v53  ;;  %6851 = vmatprep.mubr.msk.f32.mxu1 %vm7187_vm1, %v7186_v45  ;;  %v5807_v53 = vunpack.c.l.s4 %v7192_v14 }
 0x798   :  { %6859 = vmatprep.subr.mxu1 %v7186_v45 }
 0x79a   :  { %6852 = vmatmul.mubr.msk.f32.vlgmr.msra.gmra.mrb[58].mxu1 %vm45_vm2, %v7987_v59 }
 0x79b   :  { %6860 = vmatpush3.xpose.msk.msra.mxu1 %vm45_vm2, %v4193_v20  ;;  %6861 = vmatprep.mubr.msk.f32.mxu1 %vm7187_vm1, %v7186_v45  ;;  %v5808_v20 = vunpack.c.0.s8 %v5807_v53 }
 0x79c   :  { %6869 = vmatprep.subr.mxu1 %v7186_v45 }
 0x79e   :  { %6862 = vmatmul.mubr.msk.f32.vlgmr.msra.gmra.mrb[60].mxu1 %vm45_vm2, %v8007_v11 }
 0x79f   :  { %6871 = vmatprep.mubr.msk.f32.mxu1 %vm7187_vm1, %v7186_v45 }
 0x7b6   :  { %v8062_v13 = vpop.f32.mrb[42].mxu0 }
 0x7b7   :  { %v6828_v61 = vpop.f32.mrb[43].mxu0  ;;  %v4292_v5 = vsel %vm45_vm2, %v8062_v13, -inf }
 0x7b8   :  { %4293 = vmax.xlane.f32.xlu1 %v4292_v5  ;;  %v8097_v61 = vsub.s32 %v5808_v20, %v7266_v8 }
 0x7ba   :  { %v8066_v0 = vpop.f32.mrb[44].mxu0  ;;  %v8103_v5 = vrot.slane %v5982_v33, %v8097_v61  ;;  %v8123_v33 = vrot.slane %v5997_v34, %v8097_v61  ;;  %v8578_v34 = vcombine.high %v7294_v26, %v7300_v28 }
 0x7bb   :  { %v6838_v3 = vpop.f32.mrb[45].mxu0  ;;  %v4298_v54 = vsel %vm45_vm2, %v8066_v0, -inf }
 0x7bc   :  { %4299 = vmax.xlane.f32.xlu0 %v4298_v54  ;;  %v8109_v3 = vrot.slane %v6014_v38, %v8097_v61  ;;  %v8129_v38 = vrot.slane %v6029_v39, %v8097_v61  ;;  %v8579_v39 = vcombine.high %v7308_v30, %v7323_v36 }
 0x7be   :  { %v8070_v50 = vpop.f32.mrb[46].mxu0  ;;  %v6047_v54 = vcombine.low %v8103_v5, %v8109_v3  ;;  %v6048_v8 = vcombine.high %v8103_v5, %v8109_v3 }
 0x7bf   :  { %v6848_v58 = vpop.f32.mrb[47].mxu0  ;;  %v4304_v56 = vsel %vm45_vm2, %v8070_v50, -inf }
 0x7c0   :  { %4305 = vmax.xlane.f32.xlu1 %v4304_v56  ;;  %v6049_v58 = vcombine.low %v8123_v33, %v8129_v38 }
 0x7c4   :  { %4272 = vmax.xlane.f32.xlu1 %v4271_v44  ;;  %v6050_v44 = vcombine.high %v8123_v33, %v8129_v38  ;;  %v8580_v33 = vcombine.low %v7291_v25, %v7297_v27 }
 0x7c6   :  { %v8245_v38 = vrot.slane %v8580_v33, %v8097_v61 }
 0x7ca   :  { %v8076_v16 = vpop.f32.mrb[48].mxu1 }
 0x7cb   :  { %v6803_v4 = vpop.f32.mrb[49].mxu1  ;;  %v4277_v51 = vsel %vm45_vm2, %v8076_v16, -inf }
 0x7d5   :  { %4444 = vrot.lane.b32.xlu1 %v7873_v21, %s7189_s14 }
 0x7de   :  { %v4270_v24 = vpop.xlane.xlu0 %4269 }
 0x7df   :  { %v4316_v57 = vsub.f32 %v3124_v63, %v4270_v24  ;;  %v8141_v24 = vrot.slane %v8578_v34, %v8097_v61 }
 0x7e1   :  { %v4332_v41 = vmul.f32 1.442695, %v4316_v57  ;;  %v8147_v57 = vrot.slane %v8579_v39, %v8097_v61 }
 0x7e3   :  { %7116 = vpow2.f32 %v4332_v41 }
 0x7ed   :  { %v8090_v63 = vpop.eup %7116 }
 0x7ee   :  { %v4364_v52 = vsel %vm45_vm2, %v8090_v63, 0.0 }
 0x7f2   :  { %v8080_v62 = vpop.f32.mrb[48].mxu0 }
 0x7f3   :  { %v6858_v15 = vpop.f32.mrb[49].mxu0  ;;  %v4310_v42 = vsel %vm45_vm2, %v8080_v62, -inf }
 0x7f4   :  { %4311 = vmax.xlane.f32.xlu0 %v4310_v42  ;;  %v6051_v15 = vcombine.low %v8141_v24, %v8147_v57 }
 0x7f8   :  { %4278 = vmax.xlane.f32.xlu0 %v4277_v51 }
 0x7fe   :  { %v8086_v6 = vpop.f32.mrb[50].mxu1 }
 0x7ff   :  { %v6813_v37 = vpop.f32.mrb[51].mxu1  ;;  %v4283_v23 = vsel %vm45_vm2, %v8086_v6, -inf }
 0x800   :  { %4284 = vmax.xlane.f32.xlu1 %v4283_v23 }
 0x802   :  { %v8092_v1 = vpop.f32.mrb[52].mxu1 }
 0x803   :  { %v6823_v7 = vpop.f32.mrb[53].mxu1 }
 0x804   :  { %4365 = vadd.xlane.f32.xlu1 %v4364_v52 }
 0x80e   :  { %4596 = vrot.lane.b32.xlu0 %v7879_v35, %s7189_s14 }
 0x812   :  { %4748 = vrot.lane.b32.xlu0 %v7885_v2, %s7189_s14 }
 0x815   :  { %4900 = vrot.lane.b32.xlu1 %v7895_v60, %s7189_s14 }
 0x816   :  { %v4276_v56 = vpop.xlane.xlu1 %4275 }
 0x817   :  { %v4282_v4 = vpop.xlane.xlu0 %4281  ;;  %v4318_v41 = vsub.f32 %v8032_v47, %v4276_v56  ;;  %v4289_v47 = vsel %vm45_vm2, %v8092_v1, -inf }
 0x818   :  { %v4320_v37 = vsub.f32 %v8034_v55, %v4282_v4  ;;  %v6052_v55 = vcombine.high %v8141_v24, %v8147_v57 }
 0x819   :  { %v4336_v42 = vmul.f32 1.442695, %v4318_v41 }
 0x81a   :  { %v4340_v28 = vmul.f32 1.442695, %v4320_v37 }
 0x81b   :  { %v4288_v51 = vpop.xlane.xlu0 %4287  ;;  %7118 = vpow2.f32 %v4336_v42 }
 0x81c   :  { %v4322_v26 = vsub.f32 %v8040_v19, %v4288_v51  ;;  %7120 = vpow2.f32 %v4340_v28 }
 0x81e   :  { %v4344_v23 = vmul.f32 1.442695, %v4322_v26 }
 0x820   :  { %7122 = vpow2.f32 %v4344_v23 }
 0x825   :  { %v8154_v7 = vpop.eup %7118 }
 0x826   :  { %v4370_v30 = vsel %vm45_vm2, %v8154_v7, 0.0  ;;  %v8158_v36 = vpop.eup %7120 }
 0x827   :  { %v4376_v53 = vsel %vm45_vm2, %v8158_v36, 0.0 }
 0x82a   :  { %v8164_v52 = vpop.eup %7122 }
 0x82b   :  { %v4382_v20 = vsel %vm45_vm2, %v8164_v52, 0.0 }
 0x831   :  { %4371 = vadd.xlane.f32.xlu0 %v4370_v30 }
 0x835   :  { %v8166_v19 = vpop.f32.mrb[54].mxu1  ;;  %4290 = vmax.xlane.f32.xlu0 %v4289_v47 }
 0x836   :  { %v6833_v14 = vpop.f32.mrb[55].mxu1  ;;  %v4295_v56 = vsel %vm45_vm2, %v8166_v19, -inf }
 0x839   :  { %4377 = vadd.xlane.f32.xlu1 %v4376_v53  ;;  %4383 = vadd.xlane.f32.xlu0 %v4382_v20 }
 0x83d   :  { %4296 = vmax.xlane.f32.xlu0 %v4295_v56 }
 0x845   :  { %v4294_v4 = vpop.xlane.xlu1 %4293 }
 0x849   :  { %v4300_v34 = vpop.xlane.xlu0 %4299 }
 0x84a   :  { %v4326_v39 = vsub.f32 %v8066_v0, %v4300_v34  ;;  %5052 = vrot.lane.b32.xlu1 %v7905_v10, %s7189_s14  ;;  %v4324_v0 = vsub.f32 %v8062_v13, %v4294_v4 }
 0x84c   :  { %v4352_v41 = vmul.f32 1.442695, %v4326_v39 }
 0x84d   :  { %v4306_v42 = vpop.xlane.xlu1 %4305 }
 0x84e   :  { %7124 = vpow2.f32 %v4352_v41  ;;  %v4328_v51 = vsub.f32 %v8070_v50, %v4306_v42  ;;  %v4348_v50 = vmul.f32 1.442695, %v4324_v0 }
 0x850   :  { %v4356_v37 = vmul.f32 1.442695, %v4328_v51 }
 0x851   :  { %v4273_v26 = vpop.xlane.xlu1 %4272 }
 0x852   :  { %7126 = vpow2.f32 %v4356_v37  ;;  %v4317_v28 = vsub.f32 %v8030_v46, %v4273_v26 }
 0x853   :  { %7128 = vpow2.f32 %v4348_v50 }
 0x855   :  { %v4445_v23 = vpop.permute.xlu1 %4444 }
 0x856   :  { %6865 = vmatpush3.msra.mxu0 %v4445_v23 }
 0x857   :  { %6874 = vmatprep.subr.mxu0 %v7186_v45 }
 0x858   :  { %v8180_v30 = vpop.eup %7124 }
 0x859   :  { %v4394_v10 = vsel %vm45_vm2, %v8180_v30, 0.0 }
 0x85a   :  { %4395 = vadd.xlane.f32.xlu0 %v4394_v10 }
 0x85c   :  { %v8185_v47 = vpop.eup %7126 }
 0x85d   :  { %v4400_v14 = vsel %vm45_vm2, %v8185_v47, 0.0  ;;  %v8191_v53 = vpop.eup %7128 }
 0x85e   :  { %4401 = vadd.xlane.f32.xlu0 %v4400_v14  ;;  %v4388_v13 = vsel %vm45_vm2, %v8191_v53, 0.0 }
 0x869   :  { %v8189_v46 = vpop.f32.mrb[56].mxu1 }
 0x86a   :  { %v6843_v20 = vpop.f32.mrb[57].mxu1 }
 0x86d   :  { %v8193_v56 = vpop.f32.mrb[58].mxu1 }
 0x86e   :  { %v6853_v4 = vpop.f32.mrb[59].mxu1  ;;  %4389 = vadd.xlane.f32.xlu1 %v4388_v13  ;;  %v4307_v5 = vsel %vm45_vm2, %v8193_v56, -inf }
 0x871   :  { %v8197_v34 = vpop.f32.mrb[60].mxu1 }
 0x872   :  { %v6863_v39 = vpop.f32.mrb[61].mxu1 }
 0x87f   :  { %5204 = vrot.lane.b32.xlu1 %v7909_v18, %s7189_s14 }
 0x881   :  { %v4312_v41 = vpop.xlane.xlu0 %4311 }
 0x882   :  { %v4330_v42 = vsub.f32 %v8080_v62, %v4312_v41 }
 0x883   :  { %5356 = vrot.lane.b32.xlu1 %v7913_v40, %s7189_s14 }
 0x884   :  { %v4360_v51 = vmul.f32 1.442695, %v4330_v42 }
 0x885   :  { %v4279_v3 = vpop.xlane.xlu0 %4278 }
 0x886   :  { %7130 = vpow2.f32 %v4360_v51 }
 0x887   :  { %5508 = vrot.lane.b32.xlu1 %v7931_v17, %s7189_s14  ;;  %v4301_v17 = vsel %vm45_vm2, %v8189_v46, -inf }
 0x889   :  { %v4597_v26 = vpop.permute.xlu0 %4596 }
 0x88b   :  { %6058 = vrot.lane.b32.xlu1 %v6047_v54, %s7193_s3 }
 0x88d   :  { %v4285_v37 = vpop.xlane.xlu1 %4284  ;;  %v4749_v25 = vpop.permute.xlu0 %4748 }
 0x88e   :  { %v4321_v20 = vsub.f32 %v8086_v6, %v4285_v37 }
 0x88f   :  { %6062 = vrot.lane.b32.xlu1 %v6048_v8, %s7194_s21  ;;  %v4313_v8 = vsel %vm45_vm2, %v8197_v34, -inf }
 0x890   :  { %v8214_v18 = vpop.eup %7130  ;;  %v4342_v4 = vmul.f32 1.442695, %v4321_v20  ;;  %v6089_v20 = vld [vmem:[%s8569_s4 + $0x8] sm:$0xff] }
 0x891   :  { %v4366_v40 = vpop.xlane.xlu1 %4365  ;;  %v4406_v62 = vsel %vm45_vm2, %v8214_v18, 0.0 }
 0x892   :  { %4407 = vadd.xlane.f32.xlu0 %v4406_v62  ;;  %7132 = vrcp.f32 %v4366_v40 }
 0x893   :  { %6066 = vrot.lane.b32.xlu1 %v6049_v58, %s7195_s22 }
 0x896   :  { %4302 = vmax.xlane.f32.xlu0 %v4301_v17 }
 0x897   :  { %6070 = vrot.lane.b32.xlu1 %v6050_v44, %s7190_s15 }
 0x89a   :  { %4308 = vmax.xlane.f32.xlu0 %v4307_v5 }
 0x89b   :  { %6074 = vrot.lane.b32.xlu1 %v6051_v15, %s7189_s14  ;;  %v4334_v15 = vmul.f32 1.442695, %v4317_v28  ;;  %v4901_v28 = vpop.permute.xlu1 %4900 }
 0x89c   :  { %v7133_v54 = vpop.eup %7132 }
 0x89d   :  { %v4428_v58 = vmul.f32 %v7133_v54, %v8090_v63  ;;  %v8581_v63 = vcombine.low %v7305_v29, %v7311_v31  ;;  %7134 = vpow2.f32 %v4334_v15  ;;  %v4319_v31 = vsub.f32 %v8076_v16, %v4279_v3 }
 0x89e   :  { %4314 = vmax.xlane.f32.xlu0 %v4313_v8 }
 0x89f   :  { %6867 = vmatmul.mubr.msk.f32.vlgmr.msra.gmra.mrb[50].mxu0 %vm45_vm2, %v4428_v58  ;;  %v8251_v44 = vrot.slane %v8581_v63, %v8097_v61  ;;  %v4338_v14 = vmul.f32 1.442695, %v4319_v31 }
 0x8a0   :  { %6875 = vmatpush3.msra.mxu0 %v4597_v26  ;;  %6876 = vmatprep.mubr.msk.f32.mxu0 %vm7187_vm1, %v7186_v45 }
 0x8a1   :  { %6884 = vmatprep.subr.mxu0 %v7186_v45  ;;  %v6046_v23 = vcombine.high %v8245_v38, %v8251_v44 }
 0x8a7   :  { %v8260_v27 = vpop.eup %7134 }
 0x8a8   :  { %v4367_v29 = vsel %vm45_vm2, %v8260_v27, 0.0 }
 0x8b4   :  { %6054 = vrot.lane.b32.xlu0 %v6046_v23, %s7196_s23 }
 0x8b8   :  { %6078 = vrot.lane.b32.xlu0 %v6052_v55, %s7188_s13 }
 0x8be   :  { %v4372_v0 = vpop.xlane.xlu0 %4371 }
 0x8bf   :  { %7136 = vrcp.f32 %v4372_v0  ;;  %4368 = vadd.xlane.f32.xlu1 %v4367_v29 }
 0x8c2   :  { %v4291_v10 = vpop.xlane.xlu0 %4290 }
 0x8c3   :  { %v4323_v50 = vsub.f32 %v8092_v1, %v4291_v10 }
 0x8c5   :  { %v4346_v24 = vmul.f32 1.442695, %v4323_v50 }
 0x8c6   :  { %v4378_v57 = vpop.xlane.xlu1 %4377  ;;  %v4384_v55 = vpop.xlane.xlu0 %4383 }
 0x8c7   :  { %7138 = vpow2.f32 %v4346_v24 }
 0x8c8   :  { %7140 = vrcp.f32 %v4378_v57 }
 0x8c9   :  { %v7137_v13 = vpop.eup %7136  ;;  %7142 = vpow2.f32 %v4338_v14 }
 0x8ca   :  { %v4430_v39 = vmul.f32 %v7137_v13, %v8154_v7  ;;  %7144 = vrcp.f32 %v4384_v55  ;;  %v4297_v41 = vpop.xlane.xlu0 %4296  ;;  %v5053_v5 = vpop.permute.xlu1 %5052 }
 0x8cb   :  { %v4325_v16 = vsub.f32 %v8166_v19, %v4297_v41  ;;  %7146 = vpow2.f32 %v4342_v4  ;;  %v6091_v41 = vld [vmem:[%s8569_s4 + $0x18] sm:$0xff] }
 0x8cc   :  { %6877 = vmatmul.mubr.msk.f32.vlgmr.msra.gmra.mrb[52].mxu0 %vm45_vm2, %v4430_v39 }
 0x8cd   :  { %v4350_v1 = vmul.f32 1.442695, %v4325_v16  ;;  %6885 = vmatpush3.msra.mxu0 %v4749_v25  ;;  %6886 = vmatprep.mubr.msk.f32.mxu0 %vm7187_vm1, %v7186_v45 }
 0x8ce   :  { %6894 = vmatprep.subr.mxu0 %v7186_v45 }
 0x8cf   :  { %7148 = vpow2.f32 %v4350_v1 }
 0x8d1   :  { %v8273_v6 = vpop.eup %7138 }
 0x8d2   :  { %v7141_v42 = vpop.eup %7140  ;;  %v4385_v7 = vsel %vm45_vm2, %v8273_v6, 0.0 }
 0x8d3   :  { %v8277_v51 = vpop.eup %7142  ;;  %v4432_v19 = vmul.f32 %v7141_v42, %v8158_v36  ;;  %4386 = vadd.xlane.f32.xlu1 %v4385_v7  ;;  %v6093_v7 = vld [vmem:[%s8569_s4 + $0x28] sm:$0xff] }
 0x8d4   :  { %v7145_v37 = vpop.eup %7144  ;;  %v4373_v40 = vsel %vm45_vm2, %v8277_v51, 0.0 }
 0x8d5   :  { %6887 = vmatmul.mubr.msk.f32.vlgmr.msra.gmra.mrb[54].mxu0 %vm45_vm2, %v4432_v19  ;;  %v8285_v62 = vpop.eup %7146  ;;  %v4434_v17 = vmul.f32 %v7145_v37, %v8164_v52 }
 0x8d6   :  { %6895 = vmatpush3.msra.mxu0 %v4901_v28  ;;  %6896 = vmatprep.mubr.msk.f32.mxu0 %vm7187_vm1, %v7186_v45  ;;  %v4379_v36 = vsel %vm45_vm2, %v8285_v62, 0.0 }
 0x8d7   :  { %4374 = vadd.xlane.f32.xlu0 %v4373_v40  ;;  %6904 = vmatprep.subr.mxu0 %v7186_v45  ;;  %v6094_v40 = vld [vmem:[%s8569_s4 + $0x30] sm:$0xff] }
 0x8d9   :  { %6897 = vmatmul.mubr.msk.f32.vlgmr.msra.gmra.mrb[56].mxu0 %vm45_vm2, %v4434_v17  ;;  %v8294_v3 = vpop.eup %7148  ;;  %v6095_v17 = vld [vmem:[%s8569_s4 + $0x38] sm:$0xff] }
 0x8da   :  { %6905 = vmatpush3.msra.mxu0 %v5053_v5  ;;  %6906 = vmatprep.mubr.msk.f32.mxu0 %vm7187_vm1, %v7186_v45  ;;  %v4391_v52 = vsel %vm45_vm2, %v8294_v3, 0.0 }
 0x8db   :  { %4380 = vadd.xlane.f32.xlu0 %v4379_v36  ;;  %6914 = vmatprep.subr.mxu0 %v7186_v45  ;;  %v6045_v36 = vcombine.low %v8245_v38, %v8251_v44 }
 0x8df   :  { %4392 = vadd.xlane.f32.xlu0 %v4391_v52 }
 0x8e7   :  { %v4396_v54 = vpop.xlane.xlu0 %4395 }
 0x8eb   :  { %v4402_v58 = vpop.xlane.xlu0 %4401 }
 0x8fb   :  { %v4390_v8 = vpop.xlane.xlu1 %4389 }
 0x8fc   :  { %7150 = vrcp.f32 %v4390_v8 }
 0x8fd   :  { %7152 = vrcp.f32 %v4396_v54  ;;  %v7008_v54 = vpack.c.bf16 %v6095_v17, %v6094_v40 }
 0x8fe   :  { %7154 = vrcp.f32 %v4402_v58 }
 0x8ff   :  { %v5205_v26 = vpop.permute.xlu1 %5204 }
 0x903   :  { %v5357_v25 = vpop.permute.xlu1 %5356 }
 0x906   :  { %v7151_v33 = vpop.eup %7150 }
 0x907   :  { %v4436_v63 = vmul.f32 %v7151_v33, %v8191_v53  ;;  %v7153_v15 = vpop.eup %7152  ;;  %v5509_v29 = vpop.permute.xlu1 %5508  ;;  %v6097_v33 = vld [vmem:[%s8569_s4 + $0x48] sm:$0xff] }
 0x908   :  { %v4438_v23 = vmul.f32 %v7153_v15, %v8180_v30  ;;  %v7155_v0 = vpop.eup %7154  ;;  %v7197_v30 = vmov 0.0|0.0  }
 0x909   :  { %6907 = vmatmul.mubr.msk.f32.vlgmr.msra.gmra.mrb[58].mxu0 %vm45_vm2, %v4436_v63  ;;  %v4440_v53 = vmul.f32 %v7155_v0, %v8185_v47  ;;  %v6088_v47 = vld [vmem:[%s8569_s4] sm:$0xff]  ;;  %v6098_v0 = vld [vmem:[%s8569_s4 + $0x50] sm:$0xff] }
 0x90a   :  { %6915 = vmatpush3.msra.mxu0 %v5205_v26  ;;  %6916 = vmatprep.mubr.msk.f32.mxu0 %vm7187_vm1, %v7186_v45  ;;  %v6999_v13 = vpack.c.bf16 %v6089_v20, %v6088_v47  ;;  %v6096_v26 = vld [vmem:[%s8569_s4 + $0x40] sm:$0xff]  ;;  %v6102_v20 = vld [vmem:[%s8569_s4 + $0x70] sm:$0xff] }
 0x90b   :  { %6924 = vmatprep.subr.mxu0 %v7186_v45  ;;  %v6059_v1 = vpop.permute.xlu1 %6058  ;;  %v7011_v15 = vpack.c.bf16 %v6097_v33, %v6096_v26 }
 0x90d   :  { %6917 = vmatmul.mubr.msk.f32.vlgmr.msra.gmra.mrb[60].mxu0 %vm45_vm2, %v4438_v23 }
 0x90e   :  { %6925 = vmatpush3.msra.mxu0 %v5357_v25  ;;  %6926 = vmatprep.mubr.msk.f32.mxu0 %vm7187_vm1, %v7186_v45 }
 0x90f   :  { %6934 = vmatprep.subr.mxu0 %v7186_v45  ;;  %v6063_v5 = vpop.permute.xlu1 %6062 }
 0x911   :  { %6927 = vmatmul.mubr.msk.f32.vlgmr.msra.gmra.mrb[62].mxu0 %vm45_vm2, %v4440_v53  ;;  %v6099_v53 = vld [vmem:[%s8569_s4 + $0x58] sm:$0xff] }
 0x912   :  { %6935 = vmatpush3.msra.mxu0 %v5509_v29  ;;  %6936 = vmatprep.mubr.msk.f32.mxu0 %vm7187_vm1, %v7186_v45 }
 0x913   :  { %6998 = vmatprep.subr.bf16.mxu0 %v7197_v30  ;;  %v6067_v63 = vpop.permute.xlu1 %6066 }
 0x91f   :  { %v4408_v31 = vpop.xlane.xlu0 %4407 }
 0x920   :  { %7156 = vrcp.f32 %v4408_v31  ;;  %v7014_v31 = vpack.c.bf16 %v6099_v53, %v6098_v0 }
 0x923   :  { %v4303_v28 = vpop.xlane.xlu0 %4302 }
 0x924   :  { %v4327_v10 = vsub.f32 %v8189_v46, %v4303_v28  ;;  %v6090_v46 = vld [vmem:[%s8569_s4 + $0x10] sm:$0xff]  ;;  %v6100_v28 = vld [vmem:[%s8569_s4 + $0x60] sm:$0xff] }
 0x925   :  { %v7002_v42 = vpack.c.bf16 %v6091_v41, %v6090_v46 }
 0x926   :  { %v4354_v50 = vmul.f32 1.442695, %v4327_v10  ;;  %v6101_v10 = vld [vmem:[%s8569_s4 + $0x68] sm:$0xff] }
 0x927   :  { %v4309_v14 = vpop.xlane.xlu0 %4308  ;;  %v7017_v47 = vpack.c.bf16 %v6101_v10, %v6100_v28 }
 0x928   :  { %7158 = vpow2.f32 %v4354_v50  ;;  %v4329_v24 = vsub.f32 %v8193_v56, %v4309_v14  ;;  %v6071_v50 = vpop.permute.xlu1 %6070 }
 0x92a   :  { %v7157_v57 = vpop.eup %7156  ;;  %v4358_v55 = vmul.f32 1.442695, %v4329_v24  ;;  %v6103_v24 = vld [vmem:[%s8569_s4 + $0x78] sm:$0xff] }
 0x92b   :  { %v4442_v4 = vmul.f32 %v7157_v57, %v8214_v18  ;;  %v4315_v39 = vpop.xlane.xlu0 %4314  ;;  %v6092_v18 = vld [vmem:[%s8569_s4 + $0x20] sm:$0xff] }
 0x92c   :  { %7160 = vpow2.f32 %v4358_v55  ;;  %v4331_v16 = vsub.f32 %v8197_v34, %v4315_v39  ;;  %v7005_v19 = vpack.c.bf16 %v6093_v7, %v6092_v18  ;;  %v6075_v55 = vpop.permute.xlu1 %6074 }
 0x92d   :  { %6937 = vmatmul.mubr.msk.f32.vlgmr.msra.gmra.mrb[64].mxu0 %vm45_vm2, %v4442_v4 }
 0x92e   :  { %v4362_v56 = vmul.f32 1.442695, %v4331_v16  ;;  %7000 = vmatpush3.bf16.msra.mxu0 %v6999_v13  ;;  %6976 = vmatprep.mubr.msk.f32.mxu0 %vm7187_vm1, %v7186_v45  ;;  %v7020_v13 = vpack.c.bf16 %v6103_v24, %v6102_v20  ;;  %v6184_v20 = vld [vmem:[%s8570_s6 + $0x10] sm:$0xff]  ;;  %v6185_v24 = vld [vmem:[%s8570_s6 + $0x18] sm:$0xff] }
 0x92f   :  { %7001 = vmatprep.subr.bf16.mxu0 %v7197_v30  ;;  %v6055_v58 = vpop.permute.xlu0 %6054 }
 0x930   :  { %7162 = vpow2.f32 %v4362_v56  ;;  %v6081_v38 = vsel %vm54_vm0, %v6045_v36, %v6055_v58 }
 0x931   :  { %v6082_v25 = vsel %vm5905_vm3, %v6081_v38, %v6059_v1 }
 0x932   :  { %v8340_v34 = vpop.eup %7158  ;;  %7003 = vmatpush3.bf16.msra.mxu0 %v7002_v42  ;;  %v6083_v29 = vsel %vm5907_vm4, %v6082_v25, %v6063_v5 }
 0x933   :  { %v4397_v37 = vsel %vm45_vm2, %v8340_v34, 0.0  ;;  %7004 = vmatprep.subr.bf16.mxu0 %v7197_v30  ;;  %v6084_v14 = vsel %vm5909_vm5, %v6083_v29, %v6067_v63  ;;  %v6079_v39 = vpop.permute.xlu0 %6078 }
 0x934   :  { %4398 = vadd.xlane.f32.xlu1 %v4397_v37  ;;  %v6085_v57 = vsel %vm5911_vm6, %v6084_v14, %v6071_v50 }
 0x935   :  { %v6086_v4 = vsel %vm5913_vm7, %v6085_v57, %v6075_v55  ;;  %v7026_v57 = vpack.c.bf16 %v6185_v24, %v6184_v20 }
 0x936   :  { %v8353_v52 = vpop.eup %7160  ;;  %7006 = vmatpush3.bf16.msra.mxu0 %v7005_v19  ;;  %v6087_v46 = vsel %vm5915_vm8, %v6086_v4, %v6079_v39 }
 0x937   :  { %v4403_v8 = vsel %vm45_vm2, %v8353_v52, 0.0  ;;  %7007 = vmatprep.subr.bf16.mxu0 %v7197_v30 }
 0x938   :  { %4404 = vadd.xlane.f32.xlu0 %v4403_v8 }
 0x93a   :  { %v8365_v44 = vpop.eup %7162  ;;  %7009 = vmatpush3.bf16.msra.mxu0 %v7008_v54 }
 0x93b   :  { %v4409_v23 = vsel %vm45_vm2, %v8365_v44, 0.0  ;;  %7010 = vmatprep.subr.bf16.mxu0 %v7197_v30 }
 0x93c   :  { %4410 = vadd.xlane.f32.xlu0 %v4409_v23 }
 0x93e   :  { %7012 = vmatpush3.bf16.msra.mxu0 %v7011_v15 }
 0x93f   :  { %7013 = vmatprep.subr.bf16.mxu0 %v7197_v30 }
 0x942   :  { %7015 = vmatpush3.bf16.msra.mxu0 %v7014_v31  ;;  %v6183_v31 = vld [vmem:[%s8570_s6 + $0x8] sm:$0xff] }
 0x943   :  { %7016 = vmatprep.subr.bf16.mxu0 %v7197_v30 }
 0x945   :  { %4520 = vrot.lane.b32.xlu1 %v7871_v32, %s7189_s14 }
 0x946   :  { %7018 = vmatpush3.bf16.msra.mxu0 %v7017_v47 }
 0x947   :  { %7019 = vmatprep.subr.bf16.mxu0 %v7197_v30 }
 0x949   :  { %4824 = vrot.lane.b32.xlu1 %v7883_v9, %s7189_s14 }
 0x94a   :  { %7021 = vmatpush3.bf16.msra.mxu0 %v7020_v13  ;;  %v6416_v13 = vld [vmem:[%s8571_s5] ss:$0 sm:$0xff] }
 0x94c   :  { %v4369_v16 = vpop.xlane.xlu1 %4368 }
 0x94d   :  { %4976 = vrot.lane.b32.xlu1 %v7893_v43, %s7189_s14  ;;  %6977 = vmatmul.mubr.f32.vlgmr.msra.gmra.mrb[66].mxu0 %v6087_v46  ;;  %7164 = vrcp.f32 %v4369_v16 }
 0x951   :  { %5128 = vrot.lane.b32.xlu1 %v7979_v48, %s7189_s14 }
 0x952   :  { %4672 = vrot.lane.b32.xlu0 %v7877_v12, %s7189_s14 }
 0x955   :  { %5432 = vrot.lane.b32.xlu1 %v7987_v59, %s7189_s14 }
 0x956   :  { %5280 = vrot.lane.b32.xlu0 %v8001_v49, %s7189_s14 }
 0x957   :  { %v7165_v42 = vpop.eup %7164 }
 0x958   :  { %v4429_v18 = vmul.f32 %v7165_v42, %v8260_v27 }
 0x959   :  { %5700 = vrot.lane.b32.xlu1 %v7873_v21, %s7190_s15 }
 0x95a   :  { %5584 = vrot.lane.b32.xlu0 %v8007_v11, %s7189_s14 }
 0x95d   :  { %5704 = vrot.lane.b32.xlu1 %v7879_v35, %s7190_s15 }
 0x95e   :  { %5702 = vrot.lane.b32.xlu0 %v7871_v32, %s7190_s15 }
 0x961   :  { %5708 = vrot.lane.b32.xlu1 %v7885_v2, %s7190_s15 }
 0x962   :  { %5706 = vrot.lane.b32.xlu0 %v7877_v12, %s7190_s15  ;;  %v4387_v12 = vpop.xlane.xlu1 %4386 }
 0x964   :  { %v4375_v2 = vpop.xlane.xlu0 %4374 }
 0x965   :  { %7166 = vrcp.f32 %v4375_v2 }
 0x966   :  { %5710 = vrot.lane.b32.xlu0 %v7883_v9, %s7190_s15 }
 0x968   :  { %v4381_v56 = vpop.xlane.xlu0 %4380 }
 0x969   :  { %7168 = vrcp.f32 %v4381_v56 }
 0x96a   :  { %7170 = vrcp.f32 %v4387_v12 }
 0x96c   :  { %v4393_v1 = vpop.xlane.xlu0 %4392 }
 0x96d   :  { %7172 = vrcp.f32 %v4393_v1 }
 0x96f   :  { %v7167_v40 = vpop.eup %7166 }
 0x970   :  { %v4431_v5 = vmul.f32 %v7167_v40, %v8277_v51 }
 0x972   :  { %v8425_v48 = vpop.f32.mrb[50].mxu0 }
 0x973   :  { %v6868_v21 = vpop.f32.mrb[51].mxu0  ;;  %v7169_v54 = vpop.eup %7168 }
 0x974   :  { %v4433_v27 = vmul.f32 %v7169_v54, %v8285_v62  ;;  %v7171_v58 = vpop.eup %7170 }
 0x975   :  { %v4435_v51 = vmul.f32 %v7171_v58, %v8273_v6 }
 0x977   :  { %v7173_v26 = vpop.eup %7172 }
 0x978   :  { %v4437_v62 = vmul.f32 %v7173_v26, %v8294_v3 }
 0x99f   :  { %v8427_v59 = vpop.f32.mrb[52].mxu0 }
 0x9a0   :  { %v6878_v49 = vpop.f32.mrb[53].mxu0 }
 0x9a8   :  { %v8429_v11 = vpop.f32.mrb[54].mxu0 }
 0x9a9   :  { %v6888_v35 = vpop.f32.mrb[55].mxu0 }
 0x9ac   :  { %v8431_v41 = vpop.f32.mrb[56].mxu0 }
 0x9ad   :  { %v6898_v32 = vpop.f32.mrb[57].mxu0 }
 0x9c1   :  { %v4399_v9 = vpop.xlane.xlu1 %4398 }
 0x9c2   :  { %7174 = vrcp.f32 %v4399_v9 }
 0x9c5   :  { %v4521_v7 = vpop.permute.xlu1 %4520  ;;  %v4405_v19 = vpop.xlane.xlu0 %4404 }
 0x9c6   :  { %6870 = vmatpush3.msra.mxu1 %v4521_v7  ;;  %7176 = vrcp.f32 %v4405_v19 }
 0x9c7   :  { %6872 = vmatmul.mubr.msk.f32.vlgmr.msra.gmra.mrb[62].mxu1 %vm45_vm2, %v4429_v18  ;;  %6879 = vmatprep.subr.mxu1 %v7186_v45 }
 0x9c8   :  { %6881 = vmatprep.mubr.msk.f32.mxu1 %vm7187_vm1, %v7186_v45 }
 0x9c9   :  { %v4411_v37 = vpop.xlane.xlu0 %4410  ;;  %v4825_v17 = vpop.permute.xlu1 %4824 }
 0x9ca   :  { %7178 = vrcp.f32 %v4411_v37 }
 0x9cc   :  { %v7175_v38 = vpop.eup %7174 }
 0x9cd   :  { %v4673_v36 = vpop.permute.xlu0 %4672  ;;  %v4977_v8 = vpop.permute.xlu1 %4976  ;;  %v4439_v15 = vmul.f32 %v7175_v38, %v8340_v34  ;;  %v6182_v34 = vld [vmem:[%s8570_s6] sm:$0xff] }
 0x9ce   :  { %6880 = vmatpush3.msra.mxu1 %v4673_v36 }
 0x9cf   :  { %6882 = vmatmul.mubr.msk.f32.vlgmr.msra.gmra.mrb[64].mxu1 %vm45_vm2, %v4431_v5  ;;  %6889 = vmatprep.subr.mxu1 %v7186_v45 }
 0x9d0   :  { %6890 = vmatpush3.msra.mxu1 %v4825_v17  ;;  %6891 = vmatprep.mubr.msk.f32.mxu1 %vm7187_vm1, %v7186_v45  ;;  %v7177_v25 = vpop.eup %7176 }
 0x9d1   :  { %6899 = vmatprep.subr.mxu1 %v7186_v45  ;;  %v5129_v33 = vpop.permute.xlu1 %5128  ;;  %v5281_v63 = vpop.permute.xlu0 %5280  ;;  %v4441_v53 = vmul.f32 %v7177_v25, %v8353_v52  ;;  %v7023_v52 = vpack.c.bf16 %v6183_v31, %v6182_v34 }
 0x9d3   :  { %6892 = vmatmul.mubr.msk.f32.vlgmr.msra.gmra.mrb[66].mxu1 %vm45_vm2, %v4433_v27 }
 0x9d4   :  { %6900 = vmatpush3.msra.mxu1 %v4977_v8  ;;  %6901 = vmatprep.mubr.msk.f32.mxu1 %vm7187_vm1, %v7186_v45  ;;  %v7179_v28 = vpop.eup %7178 }
 0x9d5   :  { %6909 = vmatprep.subr.mxu1 %v7186_v45  ;;  %v5433_v3 = vpop.permute.xlu1 %5432  ;;  %v5585_v10 = vpop.permute.xlu0 %5584  ;;  %v4443_v14 = vmul.f32 %v7179_v28, %v8365_v44 }
 0x9d7   :  { %6902 = vmatmul.mubr.msk.f32.vlgmr.msra.gmra.mrb[68].mxu1 %vm45_vm2, %v4435_v51 }
 0x9d8   :  { %6910 = vmatpush3.msra.mxu1 %v5129_v33  ;;  %6911 = vmatprep.mubr.msk.f32.mxu1 %vm7187_vm1, %v7186_v45 }
 0x9d9   :  { %6919 = vmatprep.subr.mxu1 %v7186_v45 }
 0x9db   :  { %6912 = vmatmul.mubr.msk.f32.vlgmr.msra.gmra.mrb[70].mxu1 %vm45_vm2, %v4437_v62 }
 0x9dc   :  { %6920 = vmatpush3.msra.mxu1 %v5281_v63  ;;  %v5124_v6 = vpop.f32.mrb[58].mxu0  ;;  %6921 = vmatprep.mubr.msk.f32.mxu1 %vm7187_vm1, %v7186_v45 }
 0x9dd   :  { %v6908_v23 = vpop.f32.mrb[59].mxu0  ;;  %5668 = vrot.lane.b32.xlu1 %v5124_v6, %s7191_s20  ;;  %6929 = vmatprep.subr.mxu1 %v7186_v45 }
 0x9df   :  { %6922 = vmatmul.mubr.msk.f32.vlgmr.msra.gmra.mrb[72].mxu1 %vm45_vm2, %v4439_v15 }
 0x9e0   :  { %6930 = vmatpush3.msra.mxu1 %v5433_v3  ;;  %v5276_v0 = vpop.f32.mrb[60].mxu0  ;;  %6931 = vmatprep.mubr.msk.f32.mxu1 %vm7187_vm1, %v7186_v45 }
 0x9e1   :  { %v6918_v29 = vpop.f32.mrb[61].mxu0  ;;  %5672 = vrot.lane.b32.xlu1 %v5276_v0, %s7191_s20  ;;  %6939 = vmatprep.subr.mxu1 %v7186_v45 }
 0x9e2   :  { %v5703_v29 = vpop.permute.xlu0 %5702 }
 0x9e3   :  { %6932 = vmatmul.mubr.msk.f32.vlgmr.msra.gmra.mrb[74].mxu1 %vm45_vm2, %v4441_v53 }
 0x9e4   :  { %6940 = vmatpush3.msra.mxu1 %v5585_v10  ;;  %v5428_v50 = vpop.f32.mrb[62].mxu0  ;;  %6941 = vmatprep.mubr.msk.f32.mxu1 %vm7187_vm1, %v7186_v45 }
 0x9e5   :  { %v6928_v47 = vpop.f32.mrb[63].mxu0  ;;  %5676 = vrot.lane.b32.xlu1 %v5428_v50, %s7191_s20  ;;  %7022 = vmatprep.subr.bf16.mxu1 %v7197_v30 }
 0x9e6   :  { %v5707_v34 = vpop.permute.xlu0 %5706 }
 0x9e7   :  { %6942 = vmatmul.mubr.msk.f32.vlgmr.msra.gmra.mrb[76].mxu1 %vm45_vm2, %v4443_v14 }
 0x9e8   :  { %7024 = vmatpush3.bf16.msra.mxu1 %v7023_v52  ;;  %6987 = vmatprep.mubr.msk.f32.mxu1 %vm7187_vm1, %v7186_v45  ;;  %v5701_v45 = vpop.permute.xlu1 %5700 }
 0x9e9   :  { %7025 = vmatprep.subr.bf16.mxu1 %v7197_v30 }
 0x9ea   :  { %v5711_v31 = vpop.permute.xlu0 %5710 }
 0x9ec   :  { %7027 = vmatpush3.bf16.msra.mxu1 %v7026_v57  ;;  %v5705_v30 = vpop.permute.xlu1 %5704 }
 0x9f0   :  { %v5709_v49 = vpop.permute.xlu1 %5708 }
 0xa00   :  { %v5580_v44 = vpop.f32.mrb[64].mxu0 }
 0xa01   :  { %v6938_v55 = vpop.f32.mrb[65].mxu0  ;;  %5680 = vrot.lane.b32.xlu1 %v5580_v44, %s7191_s20 }
 0xa05   :  { %5712 = vrot.lane.b32.xlu1 %v7895_v60, %s7190_s15 }
 0xa20   :  { %v6177_v4 = vpop.f32.mrb[66].mxu0 }
 0xa21   :  { %v6178_v39 = vadd.f32 %v6416_v13, %v6177_v4  ;;  %v6978_v46 = vpop.f32.mrb[67].mxu0 }
 0xa23   :  { %v6181_v21 = vmax.f32 %v6178_v39, 0.0 }
 0xa25   :  { %6988 = vmatmul.mubr.msk.f32.vlgmr.msra.gmra.mrb[78].mxu1 %vm5905_vm3, %v6181_v21 }
 0xa4f   :  { %v5669_v35 = vpop.permute.xlu1 %5668 }
 0xa50   :  { %v5692_v32 = vsel %vm45_vm2, %v8425_v48, %v5669_v35 }
 0xa51   :  { %v5724_v16 = vadd.f32 %v5701_v45, %v5692_v32 }
 0xa53   :  { %v5673_v2 = vpop.permute.xlu1 %5672  ;;  %v5732_v12 = vmax.f32 %v5724_v16, 0.0 }
 0xa54   :  { %v5694_v60 = vsel %vm45_vm2, %v8427_v59, %v5673_v2 }
 0xa55   :  { %v5726_v56 = vadd.f32 %v5705_v30, %v5694_v60 }
 0xa57   :  { %v5734_v1 = vmax.f32 %v5726_v56, 0.0  ;;  %v5677_v18 = vpop.permute.xlu1 %5676 }
 0xa58   :  { %v5696_v7 = vsel %vm45_vm2, %v8429_v11, %v5677_v18 }
 0xa59   :  { %v5740_v9 = vcombine.low %v5732_v12, %v5734_v1  ;;  %v5741_v42 = vcombine.high %v5732_v12, %v5734_v1  ;;  %v5728_v37 = vadd.f32 %v5709_v49, %v5696_v7 }
 0xa5b   :  { %v5736_v5 = vmax.f32 %v5728_v37, 0.0  ;;  %v5755_v13 = vrot.slane %v5741_v42, %v7288_v22 }
 0xa73   :  { %v5681_v19 = vpop.permute.xlu1 %5680 }
 0xa74   :  { %v5698_v40 = vsel %vm45_vm2, %v8431_v41, %v5681_v19 }
 0xa77   :  { %v5713_v48 = vpop.permute.xlu1 %5712 }
 0xa78   :  { %v5730_v17 = vadd.f32 %v5713_v48, %v5698_v40 }
 0xa7a   :  { %v5738_v36 = vmax.f32 %v5730_v17, 0.0 }
 0xa7c   :  { %v5772_v54 = vcombine.low %v5736_v5, %v5738_v36  ;;  %v5773_v59 = vcombine.high %v5736_v5, %v5738_v36 }
 0xa7e   :  { %v5780_v42 = vrot.slane %v5772_v54, %v7288_v22  ;;  %v5787_v18 = vrot.slane %v5773_v59, %v7288_v22 }
 0xa9a   :  { %v4592_v27 = vpop.f32.mrb[62].mxu1 }
 0xa9b   :  { %v6873_v8 = vpop.f32.mrb[63].mxu1 }
 0xaa2   :  { %v4744_v58 = vpop.f32.mrb[64].mxu1 }
 0xaa3   :  { %v6883_v51 = vpop.f32.mrb[65].mxu1 }
 0xaa6   :  { %v4896_v26 = vpop.f32.mrb[66].mxu1 }
 0xaa7   :  { %v6893_v33 = vpop.f32.mrb[67].mxu1 }
 0xaaa   :  { %v5048_v62 = vpop.f32.mrb[68].mxu1 }
 0xaab   :  { %v6903_v38 = vpop.f32.mrb[69].mxu1 }
 0xaae   :  { %v5200_v11 = vpop.f32.mrb[70].mxu1 }
 0xaaf   :  { %5670 = vrot.lane.b32.xlu0 %v5200_v11, %s7191_s20  ;;  %v6913_v63 = vpop.f32.mrb[71].mxu1 }
 0xab2   :  { %v5352_v6 = vpop.f32.mrb[72].mxu1 }
 0xab3   :  { %5674 = vrot.lane.b32.xlu0 %v5352_v6, %s7191_s20  ;;  %v6923_v41 = vpop.f32.mrb[73].mxu1 }
 0xab6   :  { %v5504_v15 = vpop.f32.mrb[74].mxu1 }
 0xab7   :  { %5678 = vrot.lane.b32.xlu0 %v5504_v15, %s7191_s20  ;;  %v6933_v23 = vpop.f32.mrb[75].mxu1  ;;  %v44_v15 = vld [vmem:[%s8573_s1] sm:$0xff] }
 0xaba   :  { %v5656_v25 = vpop.f32.mrb[76].mxu1 }
 0xabb   :  { %5682 = vrot.lane.b32.xlu0 %v5656_v25, %s7191_s20  ;;  %v6943_v3 = vpop.f32.mrb[77].mxu1  ;;  %v6420_v25 = vld [vmem:[%s8574_s9] ss:$0 sm:$0xff] }
 0xabc   :  { %v46_v3 = vsel %vm45_vm2, %v44_v15, 0.0 }
 0xabf   :  { %5714 = vrot.lane.b32.xlu0 %v7893_v43, %s7190_s15  ;;  %v5748_v43 = vrot.slane %v5740_v9, %v7288_v22 }
 0xaf8   :  { %v8510_v0 = vpop.f32.mrb[78].mxu1 }
 0xaf9   :  { %v6989_v53 = vpop.f32.mrb[79].mxu1 }
 0xb21   :  { %v5671_v28 = vpop.permute.xlu0 %5670 }
 0xb22   :  { %v5693_v10 = vsel %vm45_vm2, %v4592_v27, %v5671_v28 }
 0xb23   :  { %v5725_v50 = vadd.f32 %v5703_v29, %v5693_v10 }
 0xb25   :  { %v5675_v52 = vpop.permute.xlu0 %5674  ;;  %v5733_v20 = vmax.f32 %v5725_v50, 0.0 }
 0xb26   :  { %v5695_v14 = vsel %vm45_vm2, %v4744_v58, %v5675_v52 }
 0xb27   :  { %v5727_v47 = vadd.f32 %v5707_v34, %v5695_v14 }
 0xb29   :  { %v5735_v24 = vmax.f32 %v5727_v47, 0.0  ;;  %v5679_v57 = vpop.permute.xlu0 %5678 }
 0xb2a   :  { %v5697_v46 = vsel %vm45_vm2, %v4896_v26, %v5679_v57  ;;  %v6419_v57 = vld [vmem:[%s8575_s8] ss:$0 sm:$0xff] }
 0xb2b   :  { %v5756_v44 = vcombine.low %v5733_v20, %v5735_v24  ;;  %v5757_v55 = vcombine.high %v5733_v20, %v5735_v24  ;;  %v5729_v32 = vadd.f32 %v5711_v31, %v5697_v46 }
 0xb2d   :  { %v5764_v4 = vrot.slane %v5756_v44, %v7288_v22  ;;  %v5771_v39 = vrot.slane %v5757_v55, %v7288_v22  ;;  %v5683_v21 = vpop.permute.xlu0 %5682  ;;  %v5737_v56 = vmax.f32 %v5729_v32, 0.0 }
 0xb2e   :  { %v5699_v16 = vsel %vm45_vm2, %v5048_v62, %v5683_v21 }
 0xb2f   :  { %v5804_v45 = vcombine.low %v5748_v43, %v5764_v4  ;;  %v5805_v30 = vcombine.high %v5748_v43, %v5764_v4  ;;  %v5820_v49 = vcombine.low %v5755_v13, %v5771_v39  ;;  %v5821_v35 = vcombine.high %v5755_v13, %v5771_v39 }
 0xb30   :  { %v50_v4 = vstv %s8576_s2 }
 0xb31   :  { %v5715_v2 = vpop.permute.xlu0 %5714  ;;  %v5819_v5 = vrot.slane %v5805_v30, %v8097_v61  ;;  %v5812_v36 = vrot.slane %v5804_v45, %v8097_v61  ;;  %v5828_v27 = vrot.slane %v5820_v49, %v8097_v61 }
 0xb32   :  { %v5731_v60 = vadd.f32 %v5715_v2, %v5699_v16 }
 0xb34   :  { %v5739_v12 = vmax.f32 %v5731_v60, 0.0 }
 0xb36   :  { %v5788_v1 = vcombine.low %v5737_v56, %v5739_v12  ;;  %v5789_v9 = vcombine.high %v5737_v56, %v5739_v12 }
 0xb38   :  { %v5796_v7 = vrot.slane %v5788_v1, %v7288_v22  ;;  %v5803_v19 = vrot.slane %v5789_v9, %v7288_v22  ;;  %v5835_v22 = vrot.slane %v5821_v35, %v8097_v61 }
 0xb3a   :  { %v5836_v37 = vcombine.low %v5780_v42, %v5796_v7  ;;  %v5837_v40 = vcombine.high %v5780_v42, %v5796_v7  ;;  %v5852_v48 = vcombine.low %v5787_v18, %v5803_v19  ;;  %v5853_v17 = vcombine.high %v5787_v18, %v5803_v19 }
 0xb3c   :  { %v5844_v8 = vrot.slane %v5836_v37, %v8097_v61  ;;  %v5851_v54 = vrot.slane %v5837_v40, %v8097_v61  ;;  %v5860_v59 = vrot.slane %v5852_v48, %v8097_v61  ;;  %v5867_v58 = vrot.slane %v5853_v17, %v8097_v61  ;;  %v6417_v61 = vld [vmem:[%s8572_s7] ss:$0 sm:$0xff] }
 0xb3d   :  { %v6263_v41 = vadd.f32 %v6417_v61, %v8510_v0 }
 0xb3e   :  { %v5870_v51 = vcombine.low %v5819_v5, %v5851_v54  ;;  %v5869_v26 = vcombine.high %v5812_v36, %v5844_v8  ;;  %v5872_v33 = vcombine.low %v5828_v27, %v5860_v59  ;;  %v5871_v62 = vcombine.high %v5819_v5, %v5851_v54 }
 0xb3f   :  { %v5874_v38 = vcombine.low %v5835_v22, %v5867_v58  ;;  %v5873_v11 = vcombine.high %v5828_v27, %v5860_v59  ;;  %v5875_v63 = vcombine.high %v5835_v22, %v5867_v58  ;;  %v5868_v6 = vcombine.low %v5812_v36, %v5844_v8 }
 0xb40   :  { %5881 = vrot.lane.b32.xlu0 %v5870_v51, %s7193_s3  ;;  %5877 = vrot.lane.b32.xlu1 %v5869_v26, %s7196_s23  ;;  %v6266_v23 = vmax.f32 %v6263_v41, 0.0 }
 0xb42   :  { %v6285_v53 = vmul.f32 %v6420_v25, %v6266_v23 }
 0xb44   :  { %5889 = vrot.lane.b32.xlu0 %v5872_v33, %s7195_s22  ;;  %5885 = vrot.lane.b32.xlu1 %v5871_v62, %s7194_s21  ;;  %v6286_v29 = vsel %vm54_vm0, %v6285_v53, 0.0 }
 0xb48   :  { %5897 = vrot.lane.b32.xlu0 %v5874_v38, %s7189_s14  ;;  %5893 = vrot.lane.b32.xlu1 %v5873_v11, %s7190_s15 }
 0xb4c   :  { %5901 = vrot.lane.b32.xlu1 %v5875_v63, %s7188_s13 }
 0xb67   :  { %47 = vadd.xlane.f32.xlu0 %v46_v3 }
 0xb6b   :  { %6287 = vadd.xlane.f32.xlu0 %v6286_v29 }
 0xbb2   :  { %v5882_v34 = vpop.permute.xlu0 %5881  ;;  %v5878_v31 = vpop.permute.xlu1 %5877 }
 0xbb3   :  { %v5904_v0 = vsel %vm54_vm0, %v5868_v6, %v5878_v31 }
 0xbb4   :  { %v5906_v50 = vsel %vm5905_vm3, %v5904_v0, %v5882_v34 }
 0xbb6   :  { %v5890_v28 = vpop.permute.xlu0 %5889  ;;  %v5886_v10 = vpop.permute.xlu1 %5885 }
 0xbb7   :  { %v5908_v52 = vsel %vm5907_vm4, %v5906_v50, %v5886_v10 }
 0xbb8   :  { %v5910_v47 = vsel %vm5909_vm5, %v5908_v52, %v5890_v28 }
 0xbba   :  { %v5894_v14 = vpop.permute.xlu1 %5893  ;;  %v5898_v20 = vpop.permute.xlu0 %5897 }
 0xbbb   :  { %v5912_v24 = vsel %vm5911_vm6, %v5910_v47, %v5894_v14 }
 0xbbc   :  { %v5914_v55 = vsel %vm5913_vm7, %v5912_v24, %v5898_v20 }
 0xbbe   :  { %v5902_v44 = vpop.permute.xlu1 %5901 }
 0xbbf   :  { %v5916_v43 = vsel %vm5915_vm8, %v5914_v55, %v5902_v44 }
 0xbc0   :  { %v6274_v13 = vmul.f32 %v6419_v57, %v5916_v43 }
 0xbc2   :  { %6275 = vadd.xlane.f32.xlu1 %v6274_v13 }
 0xbf4   :  { %v48_v39 = vpop.xlane.xlu0 %47 }
 0xbf5   :  { %v51_v46 = vadd.f32 %v50_v4, %v48_v39 }
 0xbf8   :  { %v6288_v30 = vpop.xlane.xlu0 %6287 }
 0xc4f   :  { %v6276_v21 = vpop.xlane.xlu1 %6275 }
 0xc50   :  { %v6277_v45 = vadd.f32 %v6276_v21, %v51_v46 }
 0xc52   :  { %v6289_v49 = vadd.f32 %v6288_v30, %v6277_v45 }
 0xc54   :  { %v6421_v35 = vmul.f32 -1.442695, %v6289_v49 }
 0xc56   :  { %7180 = vpow2.f32 %v6421_v35 }
 0xc60   :  { %v7181_v32 = vpop.eup %7180 }
 0xc61   :  { %v6293_v16 = vadd.f32 1.0, %v7181_v32 }
 0xc63   :  { %7182 = vrcp.f32 %v6293_v16 }
 0xc6d   :  { %v7183_v2 = vpop.eup %7182 }
 0xc6e   :  { %6297 = vst.msk [vmem:[%s8577_s10] sm:$0xff] %vm6296_vm9, %v7183_v2 }

</bundles_post_ra>
